<compile_context>
chip_gen: v5e
topology: v5e:2x2
jax: 0.10.0
libtpu: 0.0.40
codegen_flags: <defaults>
</compile_context>

<pallas_src>
import functools

import jax
import jax.numpy as jnp
from jax.experimental import pallas as pl
from jax.experimental.pallas import tpu as pltpu


def _round_up(x, m):
    return ((x + m - 1) // m) * m


def _vmem_limit_bytes():
    """Generation-aware VMEM budget: ~3/4 of physical capacity with headroom."""
    try:
        cap = int(pltpu.get_tpu_info().vmem_capacity_bytes)
    except Exception:  # info query unavailable -> conservative default
        cap = 64 * 1024 * 1024
    return max(32 * 1024 * 1024, (cap * 3) // 4)


def _fused_gcn_kernel(x0_hbm, adj_hbm, w_ref, b_ref, out_ref,
                      adj_vmem, act_ref, xw_ref, sem, *, h_pad):
    """One grid step == one GCN layer:  h_l = A @ (X_l @ W_l) + b_l.

    x0_hbm : [N_pad, F_max]   bf16  HBM (consumed only at layer 0)
    adj_hbm: [N_pad, N_pad]   bf16  HBM (copied once into adj_vmem)
    w_ref  : [F_max, H_pad]   bf16  streamed per layer (leading layer dim squeezed)
    b_ref  : [1, H_pad]       f32   streamed per layer (leading layer dim squeezed)
    out_ref: [N_pad, H_pad]   f32   column block `layer` of the output slab
    adj_vmem:[N_pad, N_pad]   bf16  scratch: single resident copy of adj
    act_ref: [N_pad, F_max]   bf16  scratch: relu(h) carried to the next layer
    xw_ref : [N_pad, H_pad]   f32   scratch: X @ W staging
    sem    : DMA semaphores, shape (2,)
    """
    layer = pl.program_id(0)
    num_layers = pl.num_programs(0)

    @pl.when(layer == 0)
    def _():
        # Pull adj (stays resident for all layers; exactly one VMEM copy, no
        # double buffering) and the layer-0 activation. Both DMAs overlap.
        adj_cp = pltpu.make_async_copy(adj_hbm, adj_vmem, sem.at[0])
        x0_cp = pltpu.make_async_copy(x0_hbm, act_ref, sem.at[1])
        adj_cp.start()
        x0_cp.start()
        x0_cp.wait()
        adj_cp.wait()
        # Layer 0 contracts the full (padded) input width F_max.
        xw_ref[...] = jnp.dot(act_ref[...], w_ref[...],
                              preferred_element_type=jnp.float32)

    @pl.when(layer > 0)
    def _():
        # Later layers contract only K = H_pad: no wasted MXU passes over the
        # zero-padded weight rows, and the stale x0 lanes of act_ref beyond
        # h_pad are never read.
        xw_ref[...] = jnp.dot(act_ref[:, :h_pad], w_ref[:h_pad, :],
                              preferred_element_type=jnp.float32)

    # A @ (X W) + b : bf16 MXU operands, f32 accumulation.
    h = jnp.dot(adj_vmem[...], xw_ref[...].astype(jnp.bfloat16),
                preferred_element_type=jnp.float32) + b_ref[...]

    # Pre-activation value -> x_hidden slab (matches the reference).
    # TODO(synk): emit bf16 here if downstream tolerates it (halves writeback).
    out_ref[...] = h

    @pl.when(layer < num_layers - 1)
    def _():
        # relu + bf16 cast feeds the next layer (dropout == identity in eval).
        act_ref[:, :h_pad] = jnp.maximum(h, 0.0).astype(act_ref.dtype)


def prepare_inputs(x, adj, weights, biases):
    """One-time pad/cast of graph + parameters (hoisted out of the hot path).

    Returns (x0, adj_p, w_stack, b_stack); cache these across forward calls.
    Zero padding is exact: padded rows/cols cannot perturb the f32 accumulations
    and are sliced off at the end.
    """
    n, f_in = x.shape
    hidden = weights[0].shape[1]
    n_pad = _round_up(n, 128)
    h_pad = _round_up(hidden, 128)
    f_max = max(_round_up(f_in, 128), h_pad)

    x0 = jnp.pad(x.astype(jnp.bfloat16), ((0, n_pad - n), (0, f_max - f_in)))
    adj_p = jnp.pad(adj.astype(jnp.bfloat16), ((0, n_pad - n), (0, n_pad - n)))
    # Single stack of padded weights/biases (no per-layer update-slice chain).
    w_stack = jnp.stack([
        jnp.pad(w.astype(jnp.bfloat16),
                ((0, f_max - w.shape[0]), (0, h_pad - w.shape[1])))
        for w in weights])
    b_stack = jnp.stack([
        jnp.pad(b.reshape(1, -1).astype(jnp.float32),
                ((0, 0), (0, h_pad - b.shape[-1])))
        for b in biases])
    return x0, adj_p, w_stack, b_stack


def make_autolink_forward(n, f_in, hidden, num_layers):
    """Build a jitted forward over pre-padded inputs (see prepare_inputs)."""
    n_pad = _round_up(n, 128)
    h_pad = _round_up(hidden, 128)
    f_max = max(_round_up(f_in, 128), h_pad)

    kernel = functools.partial(_fused_gcn_kernel, h_pad=h_pad)

    gcn = pl.pallas_call(
        kernel,
        out_shape=jax.ShapeDtypeStruct((n_pad, num_layers * h_pad), jnp.float32),
        grid=(num_layers,),
        in_specs=[
            pl.BlockSpec(memory_space=pl.ANY),                  # x0: HBM, layer-0 only
            pl.BlockSpec(memory_space=pl.ANY),                  # adj: HBM -> 1 VMEM copy
            pl.BlockSpec((pl.Squeezed(), f_max, h_pad), lambda l: (l, 0, 0)),  # W_l
            pl.BlockSpec((pl.Squeezed(), 1, h_pad), lambda l: (l, 0, 0)),      # b_l
        ],
        out_specs=pl.BlockSpec((n_pad, h_pad), lambda l: (0, l)),  # slab column l
        scratch_shapes=[
            pltpu.VMEM((n_pad, n_pad), jnp.bfloat16),   # resident adjacency
            pltpu.VMEM((n_pad, f_max), jnp.bfloat16),   # running activation
            pltpu.VMEM((n_pad, h_pad), jnp.float32),    # X @ W staging
            pltpu.SemaphoreType.DMA((2,)),
        ],
        compiler_params=pltpu.CompilerParams(
            dimension_semantics=("arbitrary",),   # layers carry state via scratch
            vmem_limit_bytes=_vmem_limit_bytes(),
        ),
    )

    @jax.jit
    def forward(x0, adj_p, w_stack, b_stack):
        slab = gcn(x0, adj_p, w_stack, b_stack)
        # [N_pad, L*H_pad] lane-dense slab -> [N, L, hidden] (contiguous reshape+slice).
        return slab.reshape(n_pad, num_layers, h_pad)[:n, :, :hidden]

    return forward


def autolink_forward(x, adj, weights, biases):
    """Convenience one-shot wrapper. For repeated inference prefer
    prepare_inputs() + make_autolink_forward() so padding stays off the hot path."""
    fwd = make_autolink_forward(x.shape[0], x.shape[1],
                                weights[0].shape[1], len(weights))
    return fwd(*prepare_inputs(x, adj, weights, biases))


def reference_forward(x, adj, weights, biases):
    """Pure-JAX reference mirroring the kernel's bf16-in / f32-accumulate math."""
    act = x.astype(jnp.bfloat16)
    adj_b = adj.astype(jnp.bfloat16)
    outs = []
    for layer in range(len(weights)):
        w_b = weights[layer].astype(jnp.bfloat16)
        xw = jnp.dot(act, w_b, preferred_element_type=jnp.float32).astype(jnp.bfloat16)
        h = jnp.dot(adj_b, xw, preferred_element_type=jnp.float32) + biases[layer]
        outs.append(h)
        act = jnp.maximum(h, 0.0).astype(jnp.bfloat16)
    return jnp.stack(outs, axis=1)


def build_params(key, in_channels, hidden_channels, num_layers):
    """Deterministic Glorot-style init for the GCN conv weights (shapes per __init__)."""
    weights, biases = [], []
    for layer in range(num_layers):
        fan_in = in_channels if layer == 0 else hidden_channels
        key, wk, bk = jax.random.split(key, 3)
        scale = (2.0 / (fan_in + hidden_channels)) ** 0.5
        w = scale * jax.random.normal(wk, (fan_in, hidden_channels), dtype=jnp.float32)
        b = 0.1 * jax.random.normal(bk, (1, hidden_channels), dtype=jnp.float32)
        weights.append(w)
        biases.append(b)
    return weights, biases


def build_norm_adj(key, n):
    """Deterministic symmetric-normalized dense adjacency with self loops."""
    a = (jax.random.uniform(key, (n, n)) < 0.1).astype(jnp.float32)
    a = jnp.maximum(a, a.T)                              # symmetric
    a = jnp.maximum(a, jnp.eye(n, dtype=jnp.float32))    # self loops
    deg = jnp.sum(a, axis=1)
    d_inv_sqrt = 1.0 / jnp.sqrt(deg)
    return a * d_inv_sqrt[:, None] * d_inv_sqrt[None, :]


if __name__ == "__main__":
    # Small shapes consistent with the module: N nodes, in_channels feats, 3 GCN
    # layers. in_channels > hidden so the K=h_pad fast path (layers >= 1) and the
    # padding paths are both exercised.
    N = 200
    IN_CHANNELS = 300
    HIDDEN = 64
    NUM_LAYERS = 3

    key = jax.random.PRNGKey(0)
    kx, kadj, kp = jax.random.split(key, 3)

    x = jax.random.normal(kx, (N, IN_CHANNELS), dtype=jnp.float32)
    adj = build_norm_adj(kadj, N)
    weights, biases = build_params(kp, IN_CHANNELS, HIDDEN, NUM_LAYERS)

    # Hoisted one-time prep, then the kernel-only jitted forward.
    padded = prepare_inputs(x, adj, weights, biases)
    jax.block_until_ready(padded)
    forward = make_autolink_forward(N, IN_CHANNELS, HIDDEN, NUM_LAYERS)

    x_hidden = forward(*padded)
    jax.block_until_ready(x_hidden)

    assert x_hidden.shape == (N, NUM_LAYERS, HIDDEN), x_hidden.shape

    ref = reference_forward(x, adj, weights, biases)
    max_err = float(jnp.max(jnp.abs(x_hidden - ref)))
    assert jnp.allclose(x_hidden, ref, atol=2e-2, rtol=2e-2), f"max abs err {max_err}"

    # TODO(synk): dropout omitted (eval-mode identity); SAGE variant and predictor
    #             heads (pred_pair / cross_pair / compute_*) are not part of forward().
    print("KERNEL_OK")
</pallas_src>

<mosaic_0001>
module attributes {stable_mosaic.version = 11 : i64} {
  func.func @_fused_gcn_kernel(%arg0: i32, %arg1: memref<256x384xbf16, #tpu.memory_space<any>>, %arg2: memref<256x256xbf16, #tpu.memory_space<any>>, %arg3: memref<1x384x128xbf16, #tpu.memory_space<vmem>>, %arg4: memref<1x1x128xf32, #tpu.memory_space<vmem>>, %arg5: memref<256x128xf32, #tpu.memory_space<vmem>>, %arg6: memref<256x256xbf16, #tpu.memory_space<vmem>>, %arg7: memref<256x384xbf16, #tpu.memory_space<vmem>>, %arg8: memref<256x128xf32, #tpu.memory_space<vmem>>, %arg9: memref<2x!tpu.dma_semaphore, #tpu.memory_space<semaphore_mem>>) attributes {dimension_semantics = [#tpu.dimension_semantics<arbitrary>], iteration_bounds = array<i64: 3>, scalar_prefetch = 0 : i64, scratch_operands = 4 : i64, tpu.core_type = #tpu.core_type<tc>, window_params = [{}, {}, {transform_indices = @transform_2, window_bounds = array<i64: 1, 384, 128>}, {transform_indices = @transform_3, window_bounds = array<i64: 1, 1, 128>}, {transform_indices = @transform_4, window_bounds = array<i64: 256, 128>}]} {
    %c0_i32 = arith.constant 0 : i32
    %0 = arith.cmpi eq, %arg0, %c0_i32 : i32
    %1 = arith.extui %0 : i1 to i32
    %c0_i32_0 = arith.constant 0 : i32
    %2 = arith.cmpi ne, %1, %c0_i32_0 : i32
    scf.if %2 {
      %c0_i32_12 = arith.constant 0 : i32
      %18 = tpu.memref_slice %arg9[%c0_i32_12] : memref<2x!tpu.dma_semaphore, #tpu.memory_space<semaphore_mem>> -> memref<1x!tpu.dma_semaphore, #tpu.memory_space<semaphore_mem>>
      %19 = tpu.memref_squeeze %18 : memref<1x!tpu.dma_semaphore, #tpu.memory_space<semaphore_mem>> -> memref<!tpu.dma_semaphore, #tpu.memory_space<semaphore_mem>>
      tpu.enqueue_dma source(%arg2 : memref<256x256xbf16, #tpu.memory_space<any>>) target(%arg6 : memref<256x256xbf16, #tpu.memory_space<vmem>>) target_semaphore(%19 : memref<!tpu.dma_semaphore, #tpu.memory_space<semaphore_mem>>)
      %c1_i32 = arith.constant 1 : i32
      %20 = tpu.memref_slice %arg9[%c1_i32] : memref<2x!tpu.dma_semaphore, #tpu.memory_space<semaphore_mem>> -> memref<1x!tpu.dma_semaphore, #tpu.memory_space<semaphore_mem>>
      %21 = tpu.memref_squeeze %20 : memref<1x!tpu.dma_semaphore, #tpu.memory_space<semaphore_mem>> -> memref<!tpu.dma_semaphore, #tpu.memory_space<semaphore_mem>>
      tpu.enqueue_dma source(%arg1 : memref<256x384xbf16, #tpu.memory_space<any>>) target(%arg7 : memref<256x384xbf16, #tpu.memory_space<vmem>>) target_semaphore(%21 : memref<!tpu.dma_semaphore, #tpu.memory_space<semaphore_mem>>)
      %c1_i32_13 = arith.constant 1 : i32
      %22 = tpu.memref_slice %arg9[%c1_i32_13] : memref<2x!tpu.dma_semaphore, #tpu.memory_space<semaphore_mem>> -> memref<1x!tpu.dma_semaphore, #tpu.memory_space<semaphore_mem>>
      %23 = tpu.memref_squeeze %22 : memref<1x!tpu.dma_semaphore, #tpu.memory_space<semaphore_mem>> -> memref<!tpu.dma_semaphore, #tpu.memory_space<semaphore_mem>>
      tpu.wait_dma2 semaphore(%23 : memref<!tpu.dma_semaphore, #tpu.memory_space<semaphore_mem>>) src(%arg1 : memref<256x384xbf16, #tpu.memory_space<any>>) dst(%arg7 : memref<256x384xbf16, #tpu.memory_space<vmem>>)
      %c0_i32_14 = arith.constant 0 : i32
      %24 = tpu.memref_slice %arg9[%c0_i32_14] : memref<2x!tpu.dma_semaphore, #tpu.memory_space<semaphore_mem>> -> memref<1x!tpu.dma_semaphore, #tpu.memory_space<semaphore_mem>>
      %25 = tpu.memref_squeeze %24 : memref<1x!tpu.dma_semaphore, #tpu.memory_space<semaphore_mem>> -> memref<!tpu.dma_semaphore, #tpu.memory_space<semaphore_mem>>
      tpu.wait_dma2 semaphore(%25 : memref<!tpu.dma_semaphore, #tpu.memory_space<semaphore_mem>>) src(%arg2 : memref<256x256xbf16, #tpu.memory_space<any>>) dst(%arg6 : memref<256x256xbf16, #tpu.memory_space<vmem>>)
      %c0_15 = arith.constant 0 : index
      %c0_16 = arith.constant 0 : index
      %26 = vector.load %arg7[%c0_15, %c0_16] : memref<256x384xbf16, #tpu.memory_space<vmem>>, vector<256x384xbf16>
      %c0_17 = arith.constant 0 : index
      %c0_18 = arith.constant 0 : index
      %c0_19 = arith.constant 0 : index
      %27 = vector.load %arg3[%c0_17, %c0_18, %c0_19] : memref<1x384x128xbf16, #tpu.memory_space<vmem>>, vector<1x384x128xbf16>
      %28 = vector.shape_cast %27 : vector<1x384x128xbf16> to vector<384x128xbf16>
      %cst_20 = arith.constant dense<0.000000e+00> : vector<256x128xf32>
      %29 = tpu.matmul %26, %28, %cst_20 {dimension_numbers = #tpu.dot_dimension_numbers<[1], [0], [0], [1], [0, 0, 1, 1], [], []>} : vector<256x384xbf16>, vector<384x128xbf16>, vector<256x128xf32> -> vector<256x128xf32>
      %c0_21 = arith.constant 0 : index
      %c0_22 = arith.constant 0 : index
      %30 = vector.load %arg8[%c0_21, %c0_22] : memref<256x128xf32, #tpu.memory_space<vmem>>, vector<256x128xf32>
      tpu.vector_store %arg8[%c0_21, %c0_22], %29 {strides = array<i32>} : memref<256x128xf32, #tpu.memory_space<vmem>>, vector<256x128xf32>,
    } else {
    }
    %c0_i32_1 = arith.constant 0 : i32
    %3 = arith.cmpi sgt, %arg0, %c0_i32_1 : i32
    %4 = arith.extui %3 : i1 to i32
    %c0_i32_2 = arith.constant 0 : i32
    %5 = arith.cmpi ne, %4, %c0_i32_2 : i32
    scf.if %5 {
      %c0_12 = arith.constant 0 : index
      %c0_13 = arith.constant 0 : index
      %18 = vector.load %arg7[%c0_12, %c0_13] : memref<256x384xbf16, #tpu.memory_space<vmem>>, vector<256x128xbf16>
      %c0_14 = arith.constant 0 : index
      %c0_15 = arith.constant 0 : index
      %c0_16 = arith.constant 0 : index
      %19 = vector.load %arg3[%c0_14, %c0_15, %c0_16] : memref<1x384x128xbf16, #tpu.memory_space<vmem>>, vector<1x128x128xbf16>
      %20 = vector.shape_cast %19 : vector<1x128x128xbf16> to vector<128x128xbf16>
      %cst_17 = arith.constant dense<0.000000e+00> : vector<256x128xf32>
      %21 = tpu.matmul %18, %20, %cst_17 {dimension_numbers = #tpu.dot_dimension_numbers<[1], [0], [0], [1], [0, 0, 1, 1], [], []>} : vector<256x128xbf16>, vector<128x128xbf16>, vector<256x128xf32> -> vector<256x128xf32>
      %c0_18 = arith.constant 0 : index
      %c0_19 = arith.constant 0 : index
      %22 = vector.load %arg8[%c0_18, %c0_19] : memref<256x128xf32, #tpu.memory_space<vmem>>, vector<256x128xf32>
      tpu.vector_store %arg8[%c0_18, %c0_19], %21 {strides = array<i32>} : memref<256x128xf32, #tpu.memory_space<vmem>>, vector<256x128xf32>,
    } else {
    }
    %c0 = arith.constant 0 : index
    %c0_3 = arith.constant 0 : index
    %6 = vector.load %arg6[%c0, %c0_3] : memref<256x256xbf16, #tpu.memory_space<vmem>>, vector<256x256xbf16>
    %c0_4 = arith.constant 0 : index
    %c0_5 = arith.constant 0 : index
    %7 = vector.load %arg8[%c0_4, %c0_5] : memref<256x128xf32, #tpu.memory_space<vmem>>, vector<256x128xf32>
    %8 = arith.truncf %7 : vector<256x128xf32> to vector<256x128xbf16>
    %cst = arith.constant dense<0.000000e+00> : vector<256x128xf32>
    %9 = tpu.matmul %6, %8, %cst {dimension_numbers = #tpu.dot_dimension_numbers<[1], [0], [0], [1], [0, 0, 1, 1], [], []>} : vector<256x256xbf16>, vector<256x128xbf16>, vector<256x128xf32> -> vector<256x128xf32>
    %c0_6 = arith.constant 0 : index
    %c0_7 = arith.constant 0 : index
    %c0_8 = arith.constant 0 : index
    %10 = vector.load %arg4[%c0_6, %c0_7, %c0_8] : memref<1x1x128xf32, #tpu.memory_space<vmem>>, vector<1x1x128xf32>
    %11 = vector.shape_cast %10 : vector<1x1x128xf32> to vector<1x128xf32>
    %12 = vector.broadcast %11 : vector<1x128xf32> to vector<256x128xf32>
    %13 = arith.addf %9, %12 : vector<256x128xf32>
    %c0_9 = arith.constant 0 : index
    %c0_10 = arith.constant 0 : index
    %14 = vector.load %arg5[%c0_9, %c0_10] : memref<256x128xf32, #tpu.memory_space<vmem>>, vector<256x128xf32>
    tpu.vector_store %arg5[%c0_9, %c0_10], %13 {strides = array<i32>} : memref<256x128xf32, #tpu.memory_space<vmem>>, vector<256x128xf32>,
    %c2_i32 = arith.constant 2 : i32
    %15 = arith.cmpi slt, %arg0, %c2_i32 : i32
    %16 = arith.extui %15 : i1 to i32
    %c0_i32_11 = arith.constant 0 : i32
    %17 = arith.cmpi ne, %16, %c0_i32_11 : i32
    scf.if %17 {
      %cst_12 = arith.constant 0.000000e+00 : f32
      %18 = vector.broadcast %cst_12 : f32 to vector<256x128xf32>
      %19 = arith.maximumf %13, %18 : vector<256x128xf32>
      %20 = arith.truncf %19 : vector<256x128xf32> to vector<256x128xbf16>
      %c0_13 = arith.constant 0 : index
      %c0_14 = arith.constant 0 : index
      %21 = vector.load %arg7[%c0_13, %c0_14] : memref<256x384xbf16, #tpu.memory_space<vmem>>, vector<256x128xbf16>
      tpu.vector_store %arg7[%c0_13, %c0_14], %20 {strides = array<i32>} : memref<256x384xbf16, #tpu.memory_space<vmem>>, vector<256x128xbf16>,
    } else {
    }
    return
  }
  func.func @transform_2(%arg0: i32) -> (i32, i32, i32) {
    %c0_i32 = arith.constant 0 : i32
    %c0_i32_0 = arith.constant 0 : i32
    %c0_i32_1 = arith.constant 0 : i32
    return %arg0, %c0_i32, %c0_i32_0 : i32, i32, i32
  }
  func.func @transform_3(%arg0: i32) -> (i32, i32, i32) {
    %c0_i32 = arith.constant 0 : i32
    %c0_i32_0 = arith.constant 0 : i32
    %c0_i32_1 = arith.constant 0 : i32
    return %arg0, %c0_i32, %c0_i32_0 : i32, i32, i32
  }
  func.func @transform_4(%arg0: i32) -> (i32, i32) {
    %c0_i32 = arith.constant 0 : i32
    %c0_i32_0 = arith.constant 0 : i32
    return %c0_i32, %arg0 : i32, i32
  }
}

</mosaic_0001>

<bundles_post_ra>
// kernel: forward.1
= control target key start
LH: loop header
LB: loop body
LE: loop exit
PB: predicated region body
PF: predicated region fallthrough
CT: control target
= control target key end

     0   :  { %9 = vsyncpa [#allocation7], 0  ;;  %s3644_s0 = inlined_call_operand.hbm [shape: bf16[256,384], index: 0, kind: input, shape index: {}]   ;;  %s3645_s1 = inlined_call_operand.hbm [shape: bf16[256,256], index: 1, kind: input, shape index: {}]   ;;  %s3646_s2 = inlined_call_operand.hbm [shape: bf16[3,384,128], index: 2, kind: input, shape index: {}]   ;;  %s3647_s3 = inlined_call_operand.hbm [shape: f32[3,1,128], index: 3, kind: input, shape index: {}]   ;;  %s3648_s4 = inlined_call_operand.vmem [shape: f32[256,384], index: 4, kind: output, shape index: {}]  }
   0x1   :  { %11 = vsyncpa [#allocation7 + $0x1], 0 }
   0x2   :  { %12 = vsyncpa [#allocation9], 0 }
   0x3   :  { %14 = vsyncpa [#allocation9 + $0x1], 0  ;;  %s3129_s15 = smov 0   ;;  %s3131_s16 = smov 0  }
   0x4   :  { %s3133_s17 = smov 0   ;;  %s3135_s18 = smov 0  }
   0x5 LB: > { %s3148_s19 = sadd.s32 4294967295, %s3098_s18   ;;  %s3151_s20 = sadd.s32 1, %s3098_s18   ;;  %s3098_s18 = sphi %s3135_s18, %s3656_s18   ;;  %s3094_s17 = sphi %s3133_s17, %s3655_s17   ;;  %s3090_s16 = sphi %s3131_s16, %s3654_s16   ;;  %s3086_s15 = sphi %s3129_s15, %s3653_s15  }
   0x6   : > { %s24_s21 = ssub.s32 %s3098_s18, %s3151_s20  ;;  %s27_s22 = sadd.s32 1, %s3094_s17 }
   0x7   : > { %p25_p0 = scmp.eq.s32.totalorder %s24_s21, 0  ;;  %p34_p1 = scmp.ne.s32.totalorder %s3094_s17, %s3090_s16 }
   0x8   : > { %p35_p2 = scmp.eq.s32.totalorder %s3098_s18, 0  ;;  %p40_p3 = scmp.ne.s32.totalorder %s3090_s16, %s3086_s15 }
   0x9   : > { %s3161_s23 = scalar_select %p25_p0, %s3094_s17, %s27_s22  }
   0xa   : > { %p36_p4 = por %p35_p2, %p34_p1  ;;  %p41_p5 = scmp.eq.s32.totalorder %s3148_s19, 0 }
   0xb   : > { %p90_p6 = scmp.eq.s32.totalorder %s3148_s19, 2  ;;  %p2910_p8 = scmp.lt.s32.totalorder %s3098_s18, 3 }
   0xc   : > { %p3165_p7 = por %p41_p5, %p40_p3  ;;  %s3175_s26 = sand.u32 1, %s3094_s17  }
   0xd   : > { %p3170_p9 = por %p90_p6, %p34_p1  ;;  %s2896_s27 = smul.u32 192, %s3175_s26 }
   0xe   : > { %s2897_s28 = smul.u32 192, %s3098_s18  ;;  %p3179_p10 = pnand %p2910_p8, %p36_p4 }
   0xf   : > { %s120_s7 = scalar_lea.vmem [#allocation6], %s2896_s27  ;;  %p2181_p11 = scmp.ge.s32.totalorder %s3098_s18, 1 }
  0x10   : > { %s125_s6 = scalar_lea.hbm %s3646_s2, %s2897_s28  ;;  %s128_s8 = sshll.u32 %s120_s7, 4  ;;  %s129_s8 = int_to_ptr.vmem [resolvable:$true] %s128_s8 }
  0x11   : > { %s126_s9 = sshll.u32 %s125_s6, 4  ;;  %s117_s10 = scalar_lea.sflag [#allocation7], %s3175_s26  ;;  %s127_s9 = int_to_ptr.hbm [resolvable:$true] %s126_s9 }
  0x12   : > { %s2948_s11 = sshra.s32 %s127_s9, 4  ;;  %p2952_p13 = pneg %p3179_p10  ;;  %s2949_s11 = int_to_ptr.hbm [resolvable:$true] %s2948_s11 }
  0x13   : > { %s2950_s12 = scalar_lea.hbm %s2949_s11, 192  ;;  %s2955_s15 = scalar_lea.hbm %s3646_s2, 576 }
  0x14   : > { %p2951_p12 = scmp.ne.s32.totalorder %s2949_s11, %s2950_s12  ;;  %p2956_p2 = scmp.lt.s32.totalorder %s2949_s11, %s3646_s2 }
  0x15   : > { %p2957_p3 = scmp.lt.s32.totalorder %s2955_s15, %s2950_s12 }
  0x16   : > { %p2953_p0 = pnand %p2952_p13, %p2951_p12 }
  0x17   : > { %p2958_p4 = por %p2957_p3, %p2956_p2 }
  0x18   : > { %p2954_p1 = pneg %p2953_p0 }
  0x1a   : > { %p2959_p5 = pnand %p2958_p4, %p2954_p1 }
  0x1c   : > { %2962 = shalt.err (!%p2959_p5)
}
  0x1d   : > { %s3100_s27 = smov 64   ;;  %s3101_s28 = smov 4  }
  0x1e   : > { %2906 = dma.hbm_to_vmem [thread:$0]  (!%p3179_p10), %s127_s9, 3072, %s129_s8, %s117_s10, %s3100_s27, %s3100_s27, %s3101_s28  }
  0x1f   : > { %p153_p6 = scmp.lt.s32.totalorder %s3098_s18, 4  ;;  %s144_s6 = scalar_lea.hbm %s3647_s3, %s3098_s18 }
  0x20   : > { %s146_s11 = sshll.u32 %s144_s6, 4  ;;  %s141_s12 = scalar_lea.vmem [#allocation8], %s3175_s26  ;;  %s147_s11 = int_to_ptr.hbm [resolvable:$true] %s146_s11 }
  0x21   : > { %p3208_p8 = pnand %p2181_p11, %p153_p6  ;;  %s148_s13 = sshll.u32 %s141_s12, 4  ;;  %s149_s13 = int_to_ptr.vmem [resolvable:$true] %s148_s13 }
  0x22   : > { %s139_s14 = scalar_lea.sflag [#allocation9], %s3175_s26  ;;  %s2978_s15 = sshra.s32 %s147_s11, 4  ;;  %s2979_s15 = int_to_ptr.hbm [resolvable:$true] %s2978_s15 }
  0x23   : > { %s2980_s21 = scalar_lea.hbm %s2979_s15, 1  ;;  %s2985_s9 = scalar_lea.hbm %s3647_s3, 3 }
  0x24   : > { %p2981_p12 = scmp.ne.s32.totalorder %s2979_s15, %s2980_s21  ;;  %p2986_p11 = scmp.lt.s32.totalorder %s2979_s15, %s3647_s3 }
  0x25   : > { %p2987_p2 = scmp.lt.s32.totalorder %s2985_s9, %s2980_s21 }
  0x26   : > { %p2983_p0 = pnand %p2981_p12, %p2952_p13 }
  0x27   : > { %p2988_p3 = por %p2987_p2, %p2986_p11 }
  0x28   : > { %p2984_p1 = pneg %p2983_p0 }
  0x2a   : > { %p2989_p4 = pnand %p2988_p3, %p2984_p1 }
  0x2c   : > { %2992 = shalt.err (!%p2989_p4)
}
  0x2d   : > { %2909 = dma.hbm_to_vmem [thread:$0]  (!%p3179_p10), %s147_s11, 16, %s149_s13, %s139_s14  }
  0x2e   : > { %157 = sbr.rel (%p3208_p8) target bundleno = 1013 (0x3f5), region = 28  ;;  %s3228_s26 = sand.u32 (!%p3208_p8), 1, %s3090_s16  }
  0x2f   : > { %s2898_s27 = smul.u32 (!%p3208_p8), 192, %s3228_s26  ;;  %s160_s28 = scalar_lea.sflag (!%p3208_p8), [#allocation7], %s3228_s26 }
  0x31   : > { %s3232_s30 = scalar_lea.vmem (!%p3208_p8), [#allocation6], %s2898_s27 }
  0x33   : > { %3073 = dma.done.wait (%p3165_p7), %s160_s28, 3072  }
  0x34   : > { %3075 = vsyncadd (%p3165_p7), %s160_s28, 4294964224  ;;  %s170_s29 = scalar_lea.sflag [#allocation9], %s3228_s26  ;;  %s172_s5 = scalar_lea.vmem [#allocation8], %s3228_s26 }
  0x35   : > { %3077 = dma.done.wait (%p3165_p7), %s170_s29, 16  }
  0x36   : > { %3079 = vsyncadd (%p3165_p7), %s170_s29, 4294967280  ;;  %s2182_s6 = sshll.u32 %s3228_s26, 8  ;;  %p2183_p10 = scmp.ne.s32.totalorder %s3148_s19, 0 }
  0x37   : > { %s3245_s7 = scalar_lea.vmem [#allocation10], %s2182_s6  ;;  %s208_s13 = sshll.u32 (!%p2183_p10), %s3645_s1, 4  ;;  %s209_s13 = int_to_ptr.hbm [resolvable:$true] %s208_s13 }
  0x38   : > { %200 = sbr.rel (%p2183_p10) target bundleno = 418 (0x1a2), region = 40  ;;  %s3102_s14 = smov (!%p2183_p10), [#allocation2]  }
  0x39   : > { %s210_s15 = sshll.u32 (!%p2183_p10), %s3102_s14, 4  ;;  %s222_s24 = sshll.u32 (!%p2183_p10), %s3644_s0, 4  ;;  %s211_s15 = int_to_ptr.vmem [resolvable:$true] %s210_s15  ;;  %s223_s24 = int_to_ptr.hbm [resolvable:$true] %s222_s24 }
  0x3a   : > { %213 = dma.hbm_to_vmem [thread:$0]  (!%p2183_p10), %s209_s13, 4096, %s211_s15, [#allocation5] }
  0x3b   : > { %s3103_s18 = smov (!%p2183_p10), [#allocation3]  }
  0x3c   : > { %s224_s9 = sshll.u32 (!%p2183_p10), %s3103_s18, 4  ;;  %s225_s9 = int_to_ptr.vmem [resolvable:$true] %s224_s9 }
  0x3d   : > { %227 = dma.hbm_to_vmem [thread:$0]  %s223_s24, 6144, %s225_s9, [#allocation5 + $0x1] }
  0x3e   : > { %3080 = dma.done.wait [#allocation5 + $0x1], 6144 }
  0x3f   : > { %3081 = vsyncadd [#allocation5 + $0x1], 4294961152 }
  0x40   : > { %3082 = dma.done.wait [#allocation5], 4096 }
  0x41   : > { %3083 = vsyncadd [#allocation5], 4294963200  ;;  %v2759_v0 = vld [vmem:[%s3232_s30 + $0x38] sm:$0xff]  ;;  %v2758_v3 = vld [vmem:[%s3232_s30 + $0x30] sm:$0xff] }
  0x42   : > { %v3256_v1 = vld [vmem:[%s3232_s30 + $0x78] sm:$0xff]  ;;  %747 = vmatpush.bf16.msra.mxu0 %v2759_v0  ;;  %2832 = vmatpush.bf16.msra.mxu3 %v2759_v0  ;;  %v3265_v4 = vld [vmem:[%s3232_s30 + $0x70] sm:$0xff]  ;;  %v2757_v6 = vld [vmem:[%s3232_s30 + $0x28] sm:$0xff] }
  0x43   : > { %v3259_v2 = vld [vmem:[%s3232_s30 + $0xb8] sm:$0xff]  ;;  %836 = vmatpush.bf16.msra.mxu1 %v3256_v1  ;;  %v3268_v5 = vld [vmem:[%s3232_s30 + $0xb0] sm:$0xff]  ;;  %v2765_v7 = vld [vmem:[%s3232_s30 + $0x68] sm:$0xff] }
  0x44   : > { %925 = vmatpush.bf16.msra.mxu2 %v3259_v2  ;;  %v3275_v8 = vld [vmem:[%s3232_s30 + $0xa8] sm:$0xff]  ;;  %v2756_v9 = vld [vmem:[%s3232_s30 + $0x20] sm:$0xff]  ;;  %v2755_v12 = vld [vmem:[%s3232_s30 + $0x18] sm:$0xff] }
  0x45   : > { %v2764_v10 = vld [vmem:[%s3232_s30 + $0x60] sm:$0xff]  ;;  %v2763_v13 = vld [vmem:[%s3232_s30 + $0x58] sm:$0xff]  ;;  %v2754_v15 = vld [vmem:[%s3232_s30 + $0x10] sm:$0xff] }
  0x46   : > { %748 = vmatpush.bf16.msra.mxu0 %v2758_v3  ;;  %2833 = vmatpush.bf16.msra.mxu3 %v2758_v3  ;;  %v3281_v11 = vld [vmem:[%s3232_s30 + $0xa0] sm:$0xff]  ;;  %v3287_v14 = vld [vmem:[%s3232_s30 + $0x98] sm:$0xff]  ;;  %v2762_v16 = vld [vmem:[%s3232_s30 + $0x50] sm:$0xff] }
  0x47   : > { %837 = vmatpush.bf16.msra.mxu1 %v3265_v4  ;;  %v3293_v17 = vld [vmem:[%s3232_s30 + $0x90] sm:$0xff]  ;;  %v2753_v18 = vld [vmem:[%s3232_s30 + $0x8] sm:$0xff]  ;;  %v2752_v21 = vld [vmem:[%s3232_s30] sm:$0xff] }
  0x48   : > { %926 = vmatpush.bf16.msra.mxu2 %v3268_v5  ;;  %v2761_v19 = vld [vmem:[%s3232_s30 + $0x48] sm:$0xff]  ;;  %v2760_v22 = vld [vmem:[%s3232_s30 + $0x40] sm:$0xff]  ;;  %v2188_v29 = vld [vmem:[#allocation3 + $0xc] sm:$0xf0] }
  0x49   : > { %v3299_v20 = vld [vmem:[%s3232_s30 + $0x88] sm:$0xff]  ;;  %v3304_v23 = vld [vmem:[%s3232_s30 + $0x80] sm:$0xff]  ;;  %v2706_v31 = vld [vmem:[#allocation3 + $0x10] sm:$0xf0] }
  0x4a   : > { %749 = vmatpush.bf16.msra.mxu0 %v2757_v6  ;;  %2834 = vmatpush.bf16.msra.mxu3 %v2757_v6  ;;  %v2186_v24 = vld [vmem:[#allocation3] sm:$0xf]  ;;  %v2705_v25 = vld [vmem:[#allocation3 + $0x8] sm:$0xf0]  ;;  %v2704_v28 = vld [vmem:[#allocation3 + $0x4] sm:$0xf] }
  0x4b   : > { %838 = vmatpush.bf16.msra.mxu1 %v2765_v7  ;;  %v2330_v26 = vld [vmem:[#allocation3 + $0x120] sm:$0xf]  ;;  %v2741_v27 = vld [vmem:[#allocation3 + $0x128] sm:$0xf0]  ;;  %v2194_v30 = vld [vmem:[#allocation3 + $0x8] sm:$0xf]  ;;  %v2187_v32 = vor.u32 %v2705_v25, %v2186_v24  ;;  %v2191_v34 = vor.u32 %v2704_v28, %v2188_v29 }
  0x4c   : > { %927 = vmatpush.bf16.msra.mxu2 %v3275_v8  ;;  %v2331_v33 = vor.u32 %v2741_v27, %v2330_v26  ;;  %v2195_v35 = vor.u32 %v2706_v31, %v2194_v30  ;;  %v2198_v36 = vld [vmem:[#allocation3 + $0x18] sm:$0xf]  ;;  %v2708_v37 = vld [vmem:[#allocation3 + $0x20] sm:$0xf0]  ;;  %v2707_v40 = vld [vmem:[#allocation3 + $0x1c] sm:$0xf] }
  0x4d   : > { %v2342_v38 = vld [vmem:[#allocation3 + $0x138] sm:$0xf]  ;;  %v2744_v39 = vld [vmem:[#allocation3 + $0x140] sm:$0xf0]  ;;  %v2200_v41 = vld [vmem:[#allocation3 + $0x24] sm:$0xf0]  ;;  %v2199_v44 = vor.u32 %v2708_v37, %v2198_v36 }
  0x4e   : > { %750 = vmatpush.bf16.msra.mxu0 %v2756_v9  ;;  %2835 = vmatpush.bf16.msra.mxu3 %v2756_v9  ;;  %v2206_v42 = vld [vmem:[#allocation3 + $0x20] sm:$0xf]  ;;  %v2709_v43 = vld [vmem:[#allocation3 + $0x28] sm:$0xf0]  ;;  %v2343_v45 = vor.u32 %v2744_v39, %v2342_v38  ;;  %v2203_v46 = vor.u32 %v2707_v40, %v2200_v41  ;;  %v2210_v48 = vld [vmem:[#allocation3 + $0x30] sm:$0xf] }
  0x4f   : > { %839 = vmatpush.bf16.msra.mxu1 %v2764_v10  ;;  %v2207_v47 = vor.u32 %v2709_v43, %v2206_v42  ;;  %v2711_v49 = vld [vmem:[#allocation3 + $0x38] sm:$0xf0]  ;;  %v2354_v50 = vld [vmem:[#allocation3 + $0x150] sm:$0xf]  ;;  %v2710_v52 = vld [vmem:[#allocation3 + $0x34] sm:$0xf] }
  0x50   : > { %928 = vmatpush.bf16.msra.mxu2 %v3281_v11  ;;  %v2747_v51 = vld [vmem:[#allocation3 + $0x158] sm:$0xf0]  ;;  %v2212_v53 = vld [vmem:[#allocation3 + $0x3c] sm:$0xf0]  ;;  %v2218_v54 = vld [vmem:[#allocation3 + $0x38] sm:$0xf]  ;;  %v2211_v56 = vor.u32 %v2711_v49, %v2210_v48 }
  0x51   : > { %v2712_v55 = vld [vmem:[#allocation3 + $0x40] sm:$0xf0]  ;;  %v2355_v57 = vor.u32 %v2747_v51, %v2354_v50  ;;  %v2215_v58 = vor.u32 %v2710_v52, %v2212_v53  ;;  %v2222_v60 = vld [vmem:[#allocation3 + $0x48] sm:$0xf]  ;;  %v2714_v61 = vld [vmem:[#allocation3 + $0x50] sm:$0xf0] }
  0x52   : > { %751 = vmatpush.bf16.msra.mxu0 %v2755_v12  ;;  %2836 = vmatpush.bf16.msra.mxu3 %v2755_v12  ;;  %v2219_v59 = vor.u32 %v2712_v55, %v2218_v54  ;;  %v2366_v62 = vld [vmem:[#allocation3 + $0x168] sm:$0xf]  ;;  %v2750_v63 = vld [vmem:[#allocation3 + $0x170] sm:$0xf0]  ;;  %v2713_v0 = vld [vmem:[#allocation3 + $0x4c] sm:$0xf] }
  0x53   : > { %840 = vmatpush.bf16.msra.mxu1 %v2763_v13  ;;  %v2230_v3 = vld [vmem:[#allocation3 + $0x50] sm:$0xf]  ;;  %v2367_v6 = vor.u32 %v2750_v63, %v2366_v62  ;;  %v2740_v12 = vld [vmem:[#allocation3 + $0x124] sm:$0xf]  ;;  %v2743_v24 = vld [vmem:[#allocation3 + $0x13c] sm:$0xf] }
  0x54   : > { %929 = vmatpush.bf16.msra.mxu2 %v3287_v14  ;;  %v2344_v25 = vld [vmem:[#allocation3 + $0x144] sm:$0xf0]  ;;  %v2254_v27 = vld [vmem:[#allocation3 + $0x80] sm:$0xf]  ;;  %v2721_v28 = vld [vmem:[#allocation3 + $0x88] sm:$0xf0] }
  0x55   : > { %v2248_v26 = vld [vmem:[#allocation3 + $0x84] sm:$0xf0]  ;;  %v2347_v30 = vor.u32 %v2743_v24, %v2344_v25  ;;  %v2356_v36 = vld [vmem:[#allocation3 + $0x15c] sm:$0xf0]  ;;  %v2266_v38 = vld [vmem:[#allocation3 + $0x98] sm:$0xf] }
  0x56   : > { %752 = vmatpush.bf16.msra.mxu0 %v2754_v15  ;;  %2837 = vmatpush.bf16.msra.mxu3 %v2754_v15  ;;  %v2242_v15 = vld [vmem:[#allocation3 + $0x68] sm:$0xf]  ;;  %v2260_v37 = vld [vmem:[#allocation3 + $0x9c] sm:$0xf0]  ;;  %v2724_v39 = vld [vmem:[#allocation3 + $0xa0] sm:$0xf0] }
  0x57   : > { %841 = vmatpush.bf16.msra.mxu1 %v2762_v16  ;;  %v2267_v43 = vor.u32 %v2724_v39, %v2266_v38  ;;  %v2368_v48 = vld [vmem:[#allocation3 + $0x174] sm:$0xf0]  ;;  %v2278_v50 = vld [vmem:[#allocation3 + $0xb0] sm:$0xf]  ;;  %v2727_v51 = vld [vmem:[#allocation3 + $0xb8] sm:$0xf0] }
  0x58   : > { %930 = vmatpush.bf16.msra.mxu2 %v3293_v17  ;;  %v2272_v49 = vld [vmem:[#allocation3 + $0xb4] sm:$0xf0]  ;;  %v2279_v55 = vor.u32 %v2727_v51, %v2278_v50  ;;  %v2290_v62 = vld [vmem:[#allocation3 + $0xc8] sm:$0xf]  ;;  %v2730_v63 = vld [vmem:[#allocation3 + $0xd0] sm:$0xf0] }
  0x59   : > { %v2734_v38 = vld [vmem:[#allocation3 + $0xf4] sm:$0xf]  ;;  %v2362_v39 = vld [vmem:[#allocation3 + $0x158] sm:$0xf] }
  0x5a   : > { %753 = vmatpush.bf16.msra.mxu0 %v2753_v18  ;;  %2838 = vmatpush.bf16.msra.mxu3 %v2753_v18 }
  0x5b   : > { %842 = vmatpush.bf16.msra.mxu1 %v2761_v19 }
  0x5c   : > { %931 = vmatpush.bf16.msra.mxu2 %v3299_v20 }
  0x5e   : > { %754 = vmatpush.bf16.msra.mxu0 %v2752_v21  ;;  %2839 = vmatpush.bf16.msra.mxu3 %v2752_v21 }
  0x5f   : > { %843 = vmatpush.bf16.msra.mxu1 %v2760_v22 }
  0x60   : > { %932 = vmatpush.bf16.msra.mxu2 %v3304_v23 }
  0x61   : > { %755 = vmatmul.bf16.vlgmr.msra.gmra.mxu0 %v2187_v32  ;;  %815 = vmatmul.bf16.vlgmr.msra.gmra.mxu3 %v2331_v33  ;;  %v2258_v32 = vld [vmem:[#allocation3 + $0x90] sm:$0xf]  ;;  %v2723_v33 = vld [vmem:[#allocation3 + $0x98] sm:$0xf0] }
  0x62   : > { %2840 = vmatpush.bf16.msrb.mxu3 %v3256_v1  ;;  %844 = vmatmul.bf16.vlgmr.msra.gmra.mxu1 %v2191_v34  ;;  %v2224_v1 = vld [vmem:[#allocation3 + $0x54] sm:$0xf0]  ;;  %v2722_v34 = vld [vmem:[#allocation3 + $0x94] sm:$0xf]  ;;  %v2259_v40 = vor.u32 %v2723_v33, %v2258_v32 }
  0x63   : > { %933 = vmatmul.bf16.vlgmr.msra.gmra.mxu2 %v2195_v35  ;;  %v2746_v35 = vld [vmem:[#allocation3 + $0x154] sm:$0xf]  ;;  %v2263_v42 = vor.u32 %v2722_v34, %v2260_v37  ;;  %v2735_v37 = vld [vmem:[#allocation3 + $0xf8] sm:$0xf0] }
  0x64   : > { %v2359_v41 = vor.u32 %v2746_v35, %v2356_v36  ;;  %v2306_v36 = vld [vmem:[#allocation3 + $0xf0] sm:$0xf] }
  0x66   : > { %2841 = vmatpush.bf16.msrb.mxu3 %v3265_v4  ;;  %v2715_v4 = vld [vmem:[#allocation3 + $0x58] sm:$0xf0] }
  0x67   : > { %v2231_v9 = vor.u32 %v2715_v4, %v2230_v3 }
  0x6a   : > { %2842 = vmatpush.bf16.msrb.mxu3 %v2765_v7  ;;  %v2227_v7 = vor.u32 %v2713_v0, %v2224_v1 }
  0x6e   : > { %2843 = vmatpush.bf16.msrb.mxu3 %v2764_v10  ;;  %v2716_v10 = vld [vmem:[#allocation3 + $0x64] sm:$0xf] }
  0x71   : > { %760 = vmatmul.bf16.gmra.mxu0 %v2199_v44  ;;  %820 = vmatmul.bf16.gmra.mxu3 %v2343_v45  ;;  %v2270_v44 = vld [vmem:[#allocation3 + $0xa8] sm:$0xf]  ;;  %v2726_v45 = vld [vmem:[#allocation3 + $0xb0] sm:$0xf0] }
  0x72   : > { %2844 = vmatpush.bf16.msrb.mxu3 %v2763_v13  ;;  %849 = vmatmul.bf16.gmra.mxu1 %v2203_v46  ;;  %v2332_v13 = vld [vmem:[#allocation3 + $0x12c] sm:$0xf0]  ;;  %v2725_v46 = vld [vmem:[#allocation3 + $0xac] sm:$0xf]  ;;  %v2271_v52 = vor.u32 %v2726_v45, %v2270_v44 }
  0x73   : > { %938 = vmatmul.bf16.gmra.mxu2 %v2207_v47  ;;  %v2749_v47 = vld [vmem:[#allocation3 + $0x16c] sm:$0xf]  ;;  %v2275_v54 = vor.u32 %v2725_v46, %v2272_v49 }
  0x74   : > { %v2371_v53 = vor.u32 %v2749_v47, %v2368_v48  ;;  %v2307_v47 = vor.u32 %v2735_v37, %v2306_v36 }
  0x76   : > { %2845 = vmatpush.bf16.msrb.mxu3 %v2762_v16  ;;  %v2718_v16 = vld [vmem:[#allocation3 + $0x70] sm:$0xf0] }
  0x77   : > { %v2243_v21 = vor.u32 %v2718_v16, %v2242_v15  ;;  %v2731_v15 = vld [vmem:[#allocation3 + $0xdc] sm:$0xf]  ;;  %v2350_v16 = vld [vmem:[#allocation3 + $0x140] sm:$0xf] }
  0x7a   : > { %2846 = vmatpush.bf16.msrb.mxu3 %v2761_v19 }
  0x7e   : > { %2847 = vmatpush.bf16.msrb.mxu3 %v2760_v22  ;;  %v2719_v22 = vld [vmem:[#allocation3 + $0x7c] sm:$0xf] }
  0x7f   : > { %v2251_v31 = vor.u32 %v2719_v22, %v2248_v26 }
  0x81   : > { %765 = vmatmul.bf16.gmra.mxu0 %v2211_v56  ;;  %825 = vmatmul.bf16.gmra.mxu3 %v2355_v57  ;;  %v2282_v56 = vld [vmem:[#allocation3 + $0xc0] sm:$0xf]  ;;  %v2729_v57 = vld [vmem:[#allocation3 + $0xc8] sm:$0xf0] }
  0x82   : > { %2848 = vmatpush.bf16.msra.mxu3 %v3259_v2  ;;  %854 = vmatmul.bf16.gmra.mxu1 %v2215_v58  ;;  %v2223_v2 = vor.u32 %v2714_v61, %v2222_v60  ;;  %v2728_v58 = vld [vmem:[#allocation3 + $0xc4] sm:$0xf]  ;;  %v2742_v60 = vld [vmem:[#allocation3 + $0x130] sm:$0xf0]  ;;  %v2284_v61 = vld [vmem:[#allocation3 + $0xcc] sm:$0xf0]  ;;  %v2283_v0 = vor.u32 %v2729_v57, %v2282_v56 }
  0x83   : > { %943 = vmatmul.bf16.gmra.mxu2 %v2219_v59  ;;  %v2338_v59 = vld [vmem:[#allocation3 + $0x128] sm:$0xf]  ;;  %v2287_v4 = vor.u32 %v2728_v58, %v2284_v61  ;;  %v2738_v61 = vld [vmem:[#allocation3 + $0x110] sm:$0xf0] }
  0x84   : > { %v2339_v1 = vor.u32 %v2742_v60, %v2338_v59  ;;  %v2318_v60 = vld [vmem:[#allocation3 + $0x108] sm:$0xf] }
  0x86   : > { %2849 = vmatpush.bf16.msra.mxu3 %v3268_v5  ;;  %v2234_v5 = vld [vmem:[#allocation3 + $0x60] sm:$0xf] }
  0x8a   : > { %2850 = vmatpush.bf16.msra.mxu3 %v3275_v8  ;;  %v2717_v8 = vld [vmem:[#allocation3 + $0x68] sm:$0xf0] }
  0x8b   : > { %v2235_v18 = vor.u32 %v2717_v8, %v2234_v5 }
  0x8e   : > { %2851 = vmatpush.bf16.msra.mxu3 %v3281_v11  ;;  %v2236_v11 = vld [vmem:[#allocation3 + $0x6c] sm:$0xf0] }
  0x8f   : > { %v2239_v19 = vor.u32 %v2716_v10, %v2236_v11  ;;  %v2732_v11 = vld [vmem:[#allocation3 + $0xe0] sm:$0xf0] }
  0x91   : > { %770 = vmatmul.bf16.gmra.mxu0 %v2223_v2  ;;  %830 = vmatmul.bf16.gmra.mxu3 %v2367_v6  ;;  %v2291_v2 = vor.u32 %v2730_v63, %v2290_v62  ;;  %v2737_v62 = vld [vmem:[#allocation3 + $0x10c] sm:$0xf]  ;;  %v2374_v63 = vld [vmem:[#allocation3 + $0x170] sm:$0xf] }
  0x92   : > { %2852 = vmatpush.bf16.msra.mxu3 %v3287_v14  ;;  %859 = vmatmul.bf16.gmra.mxu1 %v2227_v7  ;;  %v2335_v14 = vor.u32 %v2740_v12, %v2332_v13  ;;  %v2294_v13 = vld [vmem:[#allocation3 + $0xd8] sm:$0xf] }
  0x93   : > { %948 = vmatmul.bf16.gmra.mxu2 %v2231_v9  ;;  %v2295_v24 = vor.u32 %v2732_v11, %v2294_v13 }
  0x96   : > { %2853 = vmatpush.bf16.msra.mxu3 %v3293_v17  ;;  %v2246_v17 = vld [vmem:[#allocation3 + $0x78] sm:$0xf] }
  0x9a   : > { %2854 = vmatpush.bf16.msra.mxu3 %v3299_v20  ;;  %v2720_v20 = vld [vmem:[#allocation3 + $0x80] sm:$0xf0] }
  0x9b   : > { %v2247_v29 = vor.u32 %v2720_v20, %v2246_v17 }
  0x9e   : > { %2855 = vmatpush.bf16.msra.mxu3 %v3304_v23  ;;  %v2255_v23 = vor.u32 %v2721_v28, %v2254_v27 }
  0xa1   : > { %775 = vmatmul.bf16.gmra.mxu0 %v2235_v18  ;;  %904 = vmatmul.bf16.vlgmr.msrb.gmra.mxu3 %v2335_v14  ;;  %v2745_v18 = vld [vmem:[#allocation3 + $0x148] sm:$0xf0]  ;;  %v2296_v14 = vld [vmem:[#allocation3 + $0xe4] sm:$0xf0] }
  0xa2   : > { %864 = vmatmul.bf16.gmra.mxu1 %v2239_v19  ;;  %v2302_v19 = vld [vmem:[#allocation3 + $0xe0] sm:$0xf]  ;;  %v2351_v25 = vor.u32 %v2745_v18, %v2350_v16  ;;  %v2299_v28 = vor.u32 %v2731_v15, %v2296_v14 }
  0xa3   : > { %953 = vmatmul.bf16.gmra.mxu2 %v2243_v21  ;;  %v2733_v21 = vld [vmem:[#allocation3 + $0xe8] sm:$0xf0] }
  0xb1   : > { %780 = vmatmul.bf16.gmra.mxu0 %v2247_v29  ;;  %909 = vmatmul.bf16.gmra.mxu3 %v2347_v30  ;;  %v2303_v29 = vor.u32 %v2733_v21, %v2302_v19 }
  0xb2   : > { %869 = vmatmul.bf16.gmra.mxu1 %v2251_v31 }
  0xb3   : > { %958 = vmatmul.bf16.gmra.mxu2 %v2255_v23 }
  0xc1   : > { %785 = vmatmul.bf16.gmra.mxu0 %v2259_v40  ;;  %914 = vmatmul.bf16.gmra.mxu3 %v2359_v41  ;;  %v2748_v40 = vld [vmem:[#allocation3 + $0x160] sm:$0xf0]  ;;  %v2308_v41 = vld [vmem:[#allocation3 + $0xfc] sm:$0xf0] }
  0xc2   : > { %874 = vmatmul.bf16.gmra.mxu1 %v2263_v42  ;;  %v2314_v42 = vld [vmem:[#allocation3 + $0xf8] sm:$0xf]  ;;  %v2363_v48 = vor.u32 %v2748_v40, %v2362_v39  ;;  %v2311_v51 = vor.u32 %v2734_v38, %v2308_v41 }
  0xc3   : > { %963 = vmatmul.bf16.gmra.mxu2 %v2267_v43  ;;  %v2736_v43 = vld [vmem:[#allocation3 + $0x100] sm:$0xf0] }
  0xd1   : > { %790 = vmatmul.bf16.gmra.mxu0 %v2271_v52  ;;  %919 = vmatmul.bf16.gmra.mxu3 %v2371_v53  ;;  %v2315_v52 = vor.u32 %v2736_v43, %v2314_v42 }
  0xd2   : > { %879 = vmatmul.bf16.gmra.mxu1 %v2275_v54 }
  0xd3   : > { %968 = vmatmul.bf16.gmra.mxu2 %v2279_v55 }
  0xde   : > { %v756_v3 = vpop.f32.mrf.mxu0 }
  0xdf   : > { %v845_v6 = vpop.f32.mrf.mxu1 }
  0xe0   : > { %v846_v7 = vadd.f32 %v845_v6, %v756_v3  ;;  %v2326_v3 = vld [vmem:[#allocation3 + $0x110] sm:$0xf] }
  0xe1   : > { %795 = vmatmul.bf16.gmra.mxu0 %v2283_v0  ;;  %993 = vmatmul.bf16.vlgmr.msra.gmra.mxu3 %v2339_v1  ;;  %v2751_v0 = vld [vmem:[#allocation3 + $0x178] sm:$0xf0]  ;;  %v2320_v1 = vld [vmem:[#allocation3 + $0x114] sm:$0xf0] }
  0xe2   : > { %884 = vmatmul.bf16.gmra.mxu1 %v2287_v4  ;;  %v2739_v4 = vld [vmem:[#allocation3 + $0x118] sm:$0xf0]  ;;  %v2323_v13 = vor.u32 %v2737_v62, %v2320_v1 }
  0xe3   : > { %973 = vmatmul.bf16.gmra.mxu2 %v2291_v2  ;;  %v2327_v11 = vor.u32 %v2739_v4, %v2326_v3 }
  0xe4   : > { %v3318_v9 = vpop.f32.mrf.mxu3 }
  0xe6   : > { %v934_v5 = vpop.f32.mrf.mxu2  ;;  %v758_v10 = vpop.f32.mrf.mxu0 }
  0xe7   : > { %v935_v8 = vadd.f32 %v934_v5, %v846_v7  ;;  %v847_v12 = vpop.f32.mrf.mxu1  ;;  %v2319_v5 = vor.u32 %v2738_v61, %v2318_v60 }
  0xe8   : > { %v848_v17 = vadd.f32 %v847_v12, %v758_v10 }
  0xe9   : > { %1014 = vst [vmem:[#allocation4 + $0xb0] sm:$0xff] %v935_v8  ;;  %v2375_v8 = vor.u32 %v2751_v0, %v2374_v63 }
  0xec   : > { %v3320_v20 = vpop.f32.mrf.mxu3 }
  0xee   : > { %v936_v22 = vpop.f32.mrf.mxu2  ;;  %v761_v27 = vpop.f32.mrf.mxu0 }
  0xef   : > { %v937_v26 = vadd.f32 %v936_v22, %v848_v17  ;;  %v850_v30 = vpop.f32.mrf.mxu1 }
  0xf0   : > { %v851_v31 = vadd.f32 %v850_v30, %v761_v27 }
  0xf1   : > { %1015 = vst [vmem:[#allocation4] sm:$0xff] %v937_v26  ;;  %800 = vmatmul.bf16.gmra.mxu0 %v2295_v24  ;;  %998 = vmatmul.bf16.gmra.mxu3 %v2351_v25 }
  0xf2   : > { %889 = vmatmul.bf16.gmra.mxu1 %v2299_v28 }
  0xf3   : > { %978 = vmatmul.bf16.gmra.mxu2 %v2303_v29 }
  0xf4   : > { %v3322_v23 = vpop.f32.mrf.mxu3 }
  0xf6   : > { %v939_v32 = vpop.f32.mrf.mxu2  ;;  %v763_v34 = vpop.f32.mrf.mxu0 }
  0xf7   : > { %v940_v33 = vadd.f32 %v939_v32, %v851_v31  ;;  %v852_v35 = vpop.f32.mrf.mxu1 }
  0xf8   : > { %v853_v44 = vadd.f32 %v852_v35, %v763_v34 }
  0xf9   : > { %1016 = vst [vmem:[#allocation4 + $0xd8] sm:$0xff] %v940_v33 }
  0xfc   : > { %v3324_v45 = vpop.f32.mrf.mxu3 }
  0xfe   : > { %v941_v46 = vpop.f32.mrf.mxu2  ;;  %v766_v50 = vpop.f32.mrf.mxu0 }
  0xff   : > { %v942_v49 = vadd.f32 %v941_v46, %v853_v44  ;;  %v855_v53 = vpop.f32.mrf.mxu1 }
 0x100   : > { %v856_v54 = vadd.f32 %v855_v53, %v766_v50 }
 0x101   : > { %1017 = vst [vmem:[#allocation4 + $0x18] sm:$0xff] %v942_v49  ;;  %805 = vmatmul.bf16.gmra.mxu0 %v2307_v47  ;;  %1003 = vmatmul.bf16.gmra.mxu3 %v2363_v48 }
 0x102   : > { %894 = vmatmul.bf16.gmra.mxu1 %v2311_v51 }
 0x103   : > { %983 = vmatmul.bf16.gmra.mxu2 %v2315_v52 }
 0x104   : > { %v3326_v55 = vpop.f32.mrf.mxu3 }
 0x106   : > { %v944_v56 = vpop.f32.mrf.mxu2  ;;  %v768_v58 = vpop.f32.mrf.mxu0 }
 0x107   : > { %v945_v57 = vadd.f32 %v944_v56, %v856_v54  ;;  %v857_v59 = vpop.f32.mrf.mxu1 }
 0x108   : > { %v858_v2 = vadd.f32 %v857_v59, %v768_v58 }
 0x109   : > { %1018 = vst [vmem:[#allocation4 + $0x50] sm:$0xff] %v945_v57 }
 0x10c   : > { %v3328_v6 = vpop.f32.mrf.mxu3 }
 0x10e   : > { %v946_v7 = vpop.f32.mrf.mxu2  ;;  %v771_v12 = vpop.f32.mrf.mxu0 }
 0x10f   : > { %v947_v10 = vadd.f32 %v946_v7, %v858_v2  ;;  %v860_v15 = vpop.f32.mrf.mxu1 }
 0x110   : > { %v861_v16 = vadd.f32 %v860_v15, %v771_v12 }
 0x111   : > { %1019 = vst [vmem:[#allocation4 + $0x68] sm:$0xff] %v947_v10  ;;  %810 = vmatmul.bf16.gmra.mxu0 %v2319_v5  ;;  %1008 = vmatmul.bf16.gmra.mxu3 %v2375_v8 }
 0x112   : > { %899 = vmatmul.bf16.gmra.mxu1 %v2323_v13 }
 0x113   : > { %988 = vmatmul.bf16.gmra.mxu2 %v2327_v11 }
 0x114   : > { %v3330_v18 = vpop.f32.mrf.mxu3 }
 0x116   : > { %v949_v14 = vpop.f32.mrf.mxu2  ;;  %v773_v21 = vpop.f32.mrf.mxu0 }
 0x117   : > { %v950_v19 = vadd.f32 %v949_v14, %v861_v16  ;;  %v862_v17 = vpop.f32.mrf.mxu1 }
 0x118   : > { %v863_v22 = vadd.f32 %v862_v17, %v773_v21 }
 0x119   : > { %1020 = vst [vmem:[#allocation4 + $0x30] sm:$0xff] %v950_v19 }
 0x11c   : > { %v3332_v24 = vpop.f32.mrf.mxu3 }
 0x11e   : > { %v951_v25 = vpop.f32.mrf.mxu2  ;;  %v776_v27 = vpop.f32.mrf.mxu0 }
 0x11f   : > { %v952_v26 = vadd.f32 %v951_v25, %v863_v22  ;;  %v865_v28 = vpop.f32.mrf.mxu1 }
 0x120   : > { %v866_v29 = vadd.f32 %v865_v28, %v776_v27 }
 0x121   : > { %1021 = vst [vmem:[#allocation4 + $0x48] sm:$0xff] %v952_v26 }
 0x124   : > { %v905_v30 = vpop.f32.mrf.mxu3 }
 0x125   : > { %v906_v21 = vadd.f32 %v905_v30, %v3318_v9 }
 0x126   : > { %v954_v31 = vpop.f32.mrf.mxu2  ;;  %v778_v33 = vpop.f32.mrf.mxu0 }
 0x127   : > { %v955_v32 = vadd.f32 %v954_v31, %v866_v29  ;;  %v867_v34 = vpop.f32.mrf.mxu1 }
 0x128   : > { %v868_v35 = vadd.f32 %v867_v34, %v778_v33 }
 0x129   : > { %1022 = vst [vmem:[#allocation4 + $0x80] sm:$0xff] %v955_v32 }
 0x12c   : > { %v907_v36 = vpop.f32.mrf.mxu3 }
 0x12d   : > { %v908_v29 = vadd.f32 %v907_v36, %v3320_v20 }
 0x12e   : > { %v956_v37 = vpop.f32.mrf.mxu2  ;;  %v781_v39 = vpop.f32.mrf.mxu0 }
 0x12f   : > { %v957_v38 = vadd.f32 %v956_v37, %v868_v35  ;;  %v870_v40 = vpop.f32.mrf.mxu1 }
 0x130   : > { %v871_v41 = vadd.f32 %v870_v40, %v781_v39 }
 0x131   : > { %1023 = vst [vmem:[#allocation4 + $0x88] sm:$0xff] %v957_v38 }
 0x134   : > { %v910_v42 = vpop.f32.mrf.mxu3 }
 0x135   : > { %v911_v30 = vadd.f32 %v910_v42, %v3322_v23 }
 0x136   : > { %v959_v43 = vpop.f32.mrf.mxu2  ;;  %v783_v46 = vpop.f32.mrf.mxu0 }
 0x137   : > { %v960_v44 = vadd.f32 %v959_v43, %v871_v41  ;;  %v872_v47 = vpop.f32.mrf.mxu1 }
 0x138   : > { %v873_v48 = vadd.f32 %v872_v47, %v783_v46 }
 0x139   : > { %1024 = vst [vmem:[#allocation4 + $0xe8] sm:$0xff] %v960_v44 }
 0x13c   : > { %v3334_v49 = vpop.f32.mrf.mxu3 }
 0x13d   : > { %v913_v20 = vadd.f32 %v3334_v49, %v3324_v45 }
 0x13e   : > { %v961_v50 = vpop.f32.mrf.mxu2  ;;  %v786_v52 = vpop.f32.mrf.mxu0 }
 0x13f   : > { %v962_v51 = vadd.f32 %v961_v50, %v873_v48  ;;  %v875_v53 = vpop.f32.mrf.mxu1 }
 0x140   : > { %v876_v54 = vadd.f32 %v875_v53, %v786_v52 }
 0x141   : > { %1025 = vst [vmem:[#allocation4 + $0xb8] sm:$0xff] %v962_v51 }
 0x144   : > { %v3336_v56 = vpop.f32.mrf.mxu3 }
 0x145   : > { %v916_v42 = vadd.f32 %v3336_v56, %v3326_v55 }
 0x146   : > { %v964_v57 = vpop.f32.mrf.mxu2  ;;  %v788_v59 = vpop.f32.mrf.mxu0 }
 0x147   : > { %v965_v58 = vadd.f32 %v964_v57, %v876_v54  ;;  %v877_v60 = vpop.f32.mrf.mxu1 }
 0x148   : > { %v878_v61 = vadd.f32 %v877_v60, %v788_v59 }
 0x149   : > { %1026 = vst [vmem:[#allocation4 + $0x60] sm:$0xff] %v965_v58 }
 0x14c   : > { %v3338_v62 = vpop.f32.mrf.mxu3 }
 0x14d   : > { %v918_v49 = vadd.f32 %v3338_v62, %v3328_v6 }
 0x14e   : > { %v966_v63 = vpop.f32.mrf.mxu2  ;;  %v791_v1 = vpop.f32.mrf.mxu0 }
 0x14f   : > { %v967_v0 = vadd.f32 %v966_v63, %v878_v61  ;;  %v880_v3 = vpop.f32.mrf.mxu1 }
 0x150   : > { %v881_v4 = vadd.f32 %v880_v3, %v791_v1 }
 0x151   : > { %1027 = vst [vmem:[#allocation4 + $0xf0] sm:$0xff] %v967_v0 }
 0x154   : > { %v3340_v2 = vpop.f32.mrf.mxu3 }
 0x155   : > { %v921_v56 = vadd.f32 %v3340_v2, %v3330_v18 }
 0x156   : > { %v969_v7 = vpop.f32.mrf.mxu2  ;;  %v793_v8 = vpop.f32.mrf.mxu0 }
 0x157   : > { %v970_v5 = vadd.f32 %v969_v7, %v881_v4  ;;  %v882_v10 = vpop.f32.mrf.mxu1 }
 0x158   : > { %v883_v12 = vadd.f32 %v882_v10, %v793_v8 }
 0x159   : > { %1028 = vst [vmem:[#allocation4 + $0x8] sm:$0xff] %v970_v5 }
 0x15c   : > { %v3342_v13 = vpop.f32.mrf.mxu3 }
 0x15e   : > { %v971_v11 = vpop.f32.mrf.mxu2  ;;  %v796_v16 = vpop.f32.mrf.mxu0 }
 0x15f   : > { %v972_v15 = vadd.f32 %v971_v11, %v883_v12  ;;  %v885_v14 = vpop.f32.mrf.mxu1  ;;  %v923_v11 = vadd.f32 %v3342_v13, %v3332_v24 }
 0x160   : > { %v886_v19 = vadd.f32 %v885_v14, %v796_v16 }
 0x161   : > { %1029 = vst [vmem:[#allocation4 + $0x78] sm:$0xff] %v972_v15 }
 0x164   : > { %v994_v17 = vpop.f32.mrf.mxu3 }
 0x165   : > { %v995_v25 = vadd.f32 %v994_v17, %v906_v21 }
 0x166   : > { %v974_v22 = vpop.f32.mrf.mxu2  ;;  %v798_v27 = vpop.f32.mrf.mxu0 }
 0x167   : > { %v975_v26 = vadd.f32 %v974_v22, %v886_v19  ;;  %1038 = vst [vmem:[#allocation4 + $0xa8] sm:$0xff] %v995_v25  ;;  %v887_v28 = vpop.f32.mrf.mxu1 }
 0x168   : > { %v888_v31 = vadd.f32 %v887_v28, %v798_v27 }
 0x169   : > { %1030 = vst [vmem:[#allocation4 + $0x38] sm:$0xff] %v975_v26 }
 0x16c   : > { %v996_v32 = vpop.f32.mrf.mxu3 }
 0x16d   : > { %v997_v34 = vadd.f32 %v996_v32, %v908_v29 }
 0x16e   : > { %v976_v33 = vpop.f32.mrf.mxu2  ;;  %v801_v37 = vpop.f32.mrf.mxu0 }
 0x16f   : > { %v977_v35 = vadd.f32 %v976_v33, %v888_v31  ;;  %1039 = vst [vmem:[#allocation4 + $0xd0] sm:$0xff] %v997_v34  ;;  %v890_v38 = vpop.f32.mrf.mxu1 }
 0x170   : > { %v891_v9 = vadd.f32 %v890_v38, %v801_v37 }
 0x171   : > { %1031 = vst [vmem:[#allocation4 + $0x58] sm:$0xff] %v977_v35 }
 0x174   : > { %v999_v39 = vpop.f32.mrf.mxu3 }
 0x175   : > { %v1000_v41 = vadd.f32 %v999_v39, %v911_v30 }
 0x176   : > { %v979_v40 = vpop.f32.mrf.mxu2  ;;  %v803_v44 = vpop.f32.mrf.mxu0 }
 0x177   : > { %v980_v43 = vadd.f32 %v979_v40, %v891_v9  ;;  %1040 = vst [vmem:[#allocation4 + $0x10] sm:$0xff] %v1000_v41  ;;  %v892_v46 = vpop.f32.mrf.mxu1 }
 0x178   : > { %v893_v36 = vadd.f32 %v892_v46, %v803_v44 }
 0x179   : > { %1032 = vst [vmem:[#allocation4 + $0x40] sm:$0xff] %v980_v43 }
 0x17c   : > { %v1001_v47 = vpop.f32.mrf.mxu3 }
 0x17d   : > { %v1002_v50 = vadd.f32 %v1001_v47, %v913_v20 }
 0x17e   : > { %v981_v48 = vpop.f32.mrf.mxu2  ;;  %v806_v52 = vpop.f32.mrf.mxu0 }
 0x17f   : > { %v982_v51 = vadd.f32 %v981_v48, %v893_v36  ;;  %1041 = vst [vmem:[#allocation4 + $0x28] sm:$0xff] %v1002_v50  ;;  %v895_v53 = vpop.f32.mrf.mxu1 }
 0x180   : > { %v896_v23 = vadd.f32 %v895_v53, %v806_v52 }
 0x181   : > { %1033 = vst [vmem:[#allocation4 + $0xc8] sm:$0xff] %v982_v51 }
 0x184   : > { %v1004_v54 = vpop.f32.mrf.mxu3 }
 0x185   : > { %v1005_v58 = vadd.f32 %v1004_v54, %v916_v42 }
 0x186   : > { %v984_v57 = vpop.f32.mrf.mxu2  ;;  %v808_v60 = vpop.f32.mrf.mxu0 }
 0x187   : > { %v985_v59 = vadd.f32 %v984_v57, %v896_v23  ;;  %1042 = vst [vmem:[#allocation4 + $0xa0] sm:$0xff] %v1005_v58  ;;  %v897_v45 = vpop.f32.mrf.mxu1 }
 0x188   : > { %v898_v61 = vadd.f32 %v897_v45, %v808_v60 }
 0x189   : > { %1034 = vst [vmem:[#allocation4 + $0xe0] sm:$0xff] %v985_v59 }
 0x18c   : > { %v1006_v63 = vpop.f32.mrf.mxu3 }
 0x18d   : > { %v1007_v1 = vadd.f32 %v1006_v63, %v918_v49 }
 0x18e   : > { %v986_v0 = vpop.f32.mrf.mxu2  ;;  %v811_v4 = vpop.f32.mrf.mxu0 }
 0x18f   : > { %v987_v3 = vadd.f32 %v986_v0, %v898_v61  ;;  %1043 = vst [vmem:[#allocation4 + $0xf8] sm:$0xff] %v1007_v1  ;;  %v900_v7 = vpop.f32.mrf.mxu1 }
 0x190   : > { %v901_v55 = vadd.f32 %v900_v7, %v811_v4 }
 0x191   : > { %1035 = vst [vmem:[#allocation4 + $0x90] sm:$0xff] %v987_v3 }
 0x194   : > { %v1009_v5 = vpop.f32.mrf.mxu3 }
 0x195   : > { %v1010_v10 = vadd.f32 %v1009_v5, %v921_v56 }
 0x196   : > { %v989_v8 = vpop.f32.mrf.mxu2  ;;  %v813_v6 = vpop.f32.mrf.mxu0 }
 0x197   : > { %v990_v12 = vadd.f32 %v989_v8, %v901_v55  ;;  %1044 = vst [vmem:[#allocation4 + $0x20] sm:$0xff] %v1010_v10  ;;  %v902_v62 = vpop.f32.mrf.mxu1 }
 0x198   : > { %v903_v15 = vadd.f32 %v902_v62, %v813_v6 }
 0x199   : > { %1036 = vst [vmem:[#allocation4 + $0x70] sm:$0xff] %v990_v12 }
 0x19c   : > { %v1011_v16 = vpop.f32.mrf.mxu3 }
 0x19d   : > { %v1012_v19 = vadd.f32 %v1011_v16, %v923_v11 }
 0x19e   : > { %v991_v14 = vpop.f32.mrf.mxu2 }
 0x19f   : > { %v992_v21 = vadd.f32 %v991_v14, %v903_v15  ;;  %1045 = vst [vmem:[#allocation4 + $0x98] sm:$0xff] %v1012_v19 }
 0x1a1   : > { %1037 = vst [vmem:[#allocation4 + $0xc0] sm:$0xff] %v992_v21 }
 0x1a2 PF: > { %p2472_p7 = scmp.le.s32.totalorder %s3148_s19, 0 }
 0x1a4   : > { %1049 = sbr.rel (%p2472_p7) target bundleno = 648 (0x288), region = 52 }
 0x1a9   : > { %v2799_v18 = vld [vmem:[%s3232_s30 + $0x38] sm:$0xff]  ;;  %v2798_v24 = vld [vmem:[%s3232_s30 + $0x30] sm:$0xff]  ;;  %v2797_v2 = vld [vmem:[%s3232_s30 + $0x28] sm:$0xff] }
 0x1aa   : > { %1242 = vmatpush.bf16.msra.mxu0 %v2799_v18  ;;  %2856 = vmatpush.bf16.msra.mxu1 %v2799_v18  ;;  %v2796_v13 = vld [vmem:[%s3232_s30 + $0x20] sm:$0xff]  ;;  %v2795_v17 = vld [vmem:[%s3232_s30 + $0x18] sm:$0xff]  ;;  %v2794_v22 = vld [vmem:[%s3232_s30 + $0x10] sm:$0xff] }
 0x1ab   : > { %2857 = vmatpush.bf16.msra.mxu2 %v2799_v18  ;;  %2858 = vmatpush.bf16.msra.mxu3 %v2799_v18  ;;  %v2793_v25 = vld [vmem:[%s3232_s30 + $0x8] sm:$0xff]  ;;  %v2792_v26 = vld [vmem:[%s3232_s30] sm:$0xff]  ;;  %v2479_v39 = vld [vmem:[#allocation3 + $0x18] sm:$0xf] }
 0x1ac   : > { %v2475_v27 = vld [vmem:[#allocation3] sm:$0xf]  ;;  %v2776_v28 = vld [vmem:[#allocation3 + $0x8] sm:$0xf0]  ;;  %v2777_v40 = vld [vmem:[#allocation3 + $0x20] sm:$0xf0] }
 0x1ad   : > { %v2491_v29 = vld [vmem:[#allocation3 + $0x60] sm:$0xf]  ;;  %v2780_v31 = vld [vmem:[#allocation3 + $0x68] sm:$0xf0]  ;;  %v2476_v37 = vor.u32 %v2776_v28, %v2475_v27  ;;  %v2495_v41 = vld [vmem:[#allocation3 + $0x78] sm:$0xf]  ;;  %v2480_v47 = vor.u32 %v2777_v40, %v2479_v39 }
 0x1ae   : > { %1243 = vmatpush.bf16.msra.mxu0 %v2798_v24  ;;  %2859 = vmatpush.bf16.msra.mxu1 %v2798_v24  ;;  %v2507_v32 = vld [vmem:[#allocation3 + $0xc0] sm:$0xf]  ;;  %v2784_v33 = vld [vmem:[#allocation3 + $0xc8] sm:$0xf0]  ;;  %v2492_v38 = vor.u32 %v2780_v31, %v2491_v29  ;;  %v2781_v43 = vld [vmem:[#allocation3 + $0x80] sm:$0xf0] }
 0x1af   : > { %2860 = vmatpush.bf16.msra.mxu2 %v2798_v24  ;;  %2861 = vmatpush.bf16.msra.mxu3 %v2798_v24  ;;  %v2523_v34 = vld [vmem:[#allocation3 + $0x120] sm:$0xf]  ;;  %v2788_v35 = vld [vmem:[#allocation3 + $0x128] sm:$0xf0]  ;;  %v2508_v9 = vor.u32 %v2784_v33, %v2507_v32  ;;  %v2511_v44 = vld [vmem:[#allocation3 + $0xd8] sm:$0xf]  ;;  %v2496_v48 = vor.u32 %v2781_v43, %v2495_v41 }
 0x1b0   : > { %v2524_v30 = vor.u32 %v2788_v35, %v2523_v34  ;;  %v2785_v46 = vld [vmem:[#allocation3 + $0xe0] sm:$0xf0]  ;;  %v2527_v20 = vld [vmem:[#allocation3 + $0x138] sm:$0xf]  ;;  %v2483_v52 = vld [vmem:[#allocation3 + $0x30] sm:$0xf] }
 0x1b1   : > { %v2789_v36 = vld [vmem:[#allocation3 + $0x140] sm:$0xf0]  ;;  %v2512_v50 = vor.u32 %v2785_v46, %v2511_v44  ;;  %v2778_v53 = vld [vmem:[#allocation3 + $0x38] sm:$0xf0]  ;;  %v2499_v23 = vld [vmem:[#allocation3 + $0x90] sm:$0xf] }
 0x1b2   : > { %1244 = vmatpush.bf16.msra.mxu0 %v2797_v2  ;;  %2862 = vmatpush.bf16.msra.mxu1 %v2797_v2  ;;  %v2528_v51 = vor.u32 %v2789_v36, %v2527_v20  ;;  %v2782_v42 = vld [vmem:[#allocation3 + $0x98] sm:$0xf0]  ;;  %v2515_v54 = vld [vmem:[#allocation3 + $0xf0] sm:$0xf]  ;;  %v2484_v60 = vor.u32 %v2778_v53, %v2483_v52  ;;  %v2487_v63 = vld [vmem:[#allocation3 + $0x48] sm:$0xf] }
 0x1b3   : > { %2863 = vmatpush.bf16.msra.mxu2 %v2797_v2  ;;  %2864 = vmatpush.bf16.msra.mxu3 %v2797_v2  ;;  %v2786_v57 = vld [vmem:[#allocation3 + $0xf8] sm:$0xf0]  ;;  %v2531_v58 = vld [vmem:[#allocation3 + $0x150] sm:$0xf]  ;;  %v2500_v45 = vor.u32 %v2782_v42, %v2499_v23  ;;  %v2779_v0 = vld [vmem:[#allocation3 + $0x50] sm:$0xf0] }
 0x1b4   : > { %v2790_v59 = vld [vmem:[#allocation3 + $0x158] sm:$0xf0]  ;;  %v2516_v49 = vor.u32 %v2786_v57, %v2515_v54  ;;  %v2503_v1 = vld [vmem:[#allocation3 + $0xa8] sm:$0xf]  ;;  %v2783_v3 = vld [vmem:[#allocation3 + $0xb0] sm:$0xf0]  ;;  %v2488_v5 = vor.u32 %v2779_v0, %v2487_v63 }
 0x1b5   : > { %v2532_v61 = vor.u32 %v2790_v59, %v2531_v58  ;;  %v2519_v4 = vld [vmem:[#allocation3 + $0x108] sm:$0xf]  ;;  %v2787_v7 = vld [vmem:[#allocation3 + $0x110] sm:$0xf0]  ;;  %v2504_v8 = vor.u32 %v2783_v3, %v2503_v1 }
 0x1b6   : > { %1245 = vmatpush.bf16.msra.mxu0 %v2796_v13  ;;  %2865 = vmatpush.bf16.msra.mxu1 %v2796_v13  ;;  %v2535_v55 = vld [vmem:[#allocation3 + $0x168] sm:$0xf]  ;;  %v2791_v56 = vld [vmem:[#allocation3 + $0x170] sm:$0xf0]  ;;  %v2520_v10 = vor.u32 %v2787_v7, %v2519_v4 }
 0x1b7   : > { %2866 = vmatpush.bf16.msra.mxu2 %v2796_v13  ;;  %2867 = vmatpush.bf16.msra.mxu3 %v2796_v13  ;;  %v2536_v12 = vor.u32 %v2791_v56, %v2535_v55 }
 0x1ba   : > { %1246 = vmatpush.bf16.msra.mxu0 %v2795_v17  ;;  %2868 = vmatpush.bf16.msra.mxu1 %v2795_v17 }
 0x1bb   : > { %2869 = vmatpush.bf16.msra.mxu2 %v2795_v17  ;;  %2870 = vmatpush.bf16.msra.mxu3 %v2795_v17 }
 0x1be   : > { %1247 = vmatpush.bf16.msra.mxu0 %v2794_v22  ;;  %2871 = vmatpush.bf16.msra.mxu1 %v2794_v22 }
 0x1bf   : > { %2872 = vmatpush.bf16.msra.mxu2 %v2794_v22  ;;  %2873 = vmatpush.bf16.msra.mxu3 %v2794_v22 }
 0x1c2   : > { %1248 = vmatpush.bf16.msra.mxu0 %v2793_v25  ;;  %2874 = vmatpush.bf16.msra.mxu1 %v2793_v25 }
 0x1c3   : > { %2875 = vmatpush.bf16.msra.mxu2 %v2793_v25  ;;  %2876 = vmatpush.bf16.msra.mxu3 %v2793_v25 }
 0x1c6   : > { %1249 = vmatpush.bf16.msra.mxu0 %v2792_v26  ;;  %2877 = vmatpush.bf16.msra.mxu1 %v2792_v26 }
 0x1c7   : > { %2878 = vmatpush.bf16.msra.mxu2 %v2792_v26  ;;  %2879 = vmatpush.bf16.msra.mxu3 %v2792_v26 }
 0x1c9   : > { %1250 = vmatmul.bf16.vlgmr.msra.gmra.mxu0 %v2476_v37  ;;  %1270 = vmatmul.bf16.vlgmr.msra.gmra.mxu1 %v2492_v38 }
 0x1ca   : > { %1290 = vmatmul.bf16.vlgmr.msra.gmra.mxu2 %v2508_v9  ;;  %1310 = vmatmul.bf16.vlgmr.msra.gmra.mxu3 %v2524_v30 }
 0x1d9   : > { %1255 = vmatmul.bf16.gmra.mxu0 %v2480_v47  ;;  %1275 = vmatmul.bf16.gmra.mxu1 %v2496_v48 }
 0x1da   : > { %1295 = vmatmul.bf16.gmra.mxu2 %v2512_v50  ;;  %1315 = vmatmul.bf16.gmra.mxu3 %v2528_v51 }
 0x1e9   : > { %1260 = vmatmul.bf16.gmra.mxu0 %v2484_v60  ;;  %1280 = vmatmul.bf16.gmra.mxu1 %v2500_v45 }
 0x1ea   : > { %1300 = vmatmul.bf16.gmra.mxu2 %v2516_v49  ;;  %1320 = vmatmul.bf16.gmra.mxu3 %v2532_v61 }
 0x1f9   : > { %1265 = vmatmul.bf16.gmra.mxu0 %v2488_v5  ;;  %1285 = vmatmul.bf16.gmra.mxu1 %v2504_v8 }
 0x1fa   : > { %1305 = vmatmul.bf16.gmra.mxu2 %v2520_v10  ;;  %1325 = vmatmul.bf16.gmra.mxu3 %v2536_v12 }
 0x246   : > { %v1251_v6 = vpop.f32.mrf.mxu0  ;;  %v1271_v62 = vpop.f32.mrf.mxu1 }
 0x247   : > { %1331 = vst [vmem:[#allocation4 + $0xb0] sm:$0xff] %v1251_v6 }
 0x248   : > { %1339 = vst [vmem:[#allocation4 + $0x80] sm:$0xff] %v1271_v62 }
 0x24d   : > { %v1291_v11 = vpop.f32.mrf.mxu2  ;;  %v1311_v15 = vpop.f32.mrf.mxu3 }
 0x24e   : > { %1347 = vst [vmem:[#allocation4 + $0x38] sm:$0xff] %v1291_v11  ;;  %v1253_v16 = vpop.f32.mrf.mxu0  ;;  %v1273_v14 = vpop.f32.mrf.mxu1 }
 0x24f   : > { %1355 = vst [vmem:[#allocation4 + $0xa8] sm:$0xff] %v1311_v15 }
 0x250   : > { %1332 = vst [vmem:[#allocation4] sm:$0xff] %v1253_v16 }
 0x251   : > { %1340 = vst [vmem:[#allocation4 + $0x88] sm:$0xff] %v1273_v14 }
 0x255   : > { %v1293_v19 = vpop.f32.mrf.mxu2  ;;  %v1313_v21 = vpop.f32.mrf.mxu3 }
 0x256   : > { %1348 = vst [vmem:[#allocation4 + $0x58] sm:$0xff] %v1293_v19  ;;  %v1256_v18 = vpop.f32.mrf.mxu0  ;;  %v1276_v24 = vpop.f32.mrf.mxu1 }
 0x257   : > { %1356 = vst [vmem:[#allocation4 + $0xd0] sm:$0xff] %v1313_v21 }
 0x258   : > { %1333 = vst [vmem:[#allocation4 + $0xd8] sm:$0xff] %v1256_v18 }
 0x259   : > { %1341 = vst [vmem:[#allocation4 + $0xe8] sm:$0xff] %v1276_v24 }
 0x25d   : > { %v1296_v2 = vpop.f32.mrf.mxu2  ;;  %v1316_v13 = vpop.f32.mrf.mxu3 }
 0x25e   : > { %1349 = vst [vmem:[#allocation4 + $0x40] sm:$0xff] %v1296_v2  ;;  %v1258_v17 = vpop.f32.mrf.mxu0  ;;  %v1278_v22 = vpop.f32.mrf.mxu1 }
 0x25f   : > { %1357 = vst [vmem:[#allocation4 + $0x10] sm:$0xff] %v1316_v13 }
 0x260   : > { %1334 = vst [vmem:[#allocation4 + $0x18] sm:$0xff] %v1258_v17 }
 0x261   : > { %1342 = vst [vmem:[#allocation4 + $0xb8] sm:$0xff] %v1278_v22 }
 0x265   : > { %v1298_v25 = vpop.f32.mrf.mxu2  ;;  %v1318_v26 = vpop.f32.mrf.mxu3 }
 0x266   : > { %1350 = vst [vmem:[#allocation4 + $0xc8] sm:$0xff] %v1298_v25  ;;  %v1261_v27 = vpop.f32.mrf.mxu0  ;;  %v1281_v28 = vpop.f32.mrf.mxu1 }
 0x267   : > { %1358 = vst [vmem:[#allocation4 + $0x28] sm:$0xff] %v1318_v26 }
 0x268   : > { %1335 = vst [vmem:[#allocation4 + $0x50] sm:$0xff] %v1261_v27 }
 0x269   : > { %1343 = vst [vmem:[#allocation4 + $0x60] sm:$0xff] %v1281_v28 }
 0x26d   : > { %v1301_v29 = vpop.f32.mrf.mxu2  ;;  %v1321_v31 = vpop.f32.mrf.mxu3 }
 0x26e   : > { %1351 = vst [vmem:[#allocation4 + $0xe0] sm:$0xff] %v1301_v29  ;;  %v1263_v32 = vpop.f32.mrf.mxu0  ;;  %v1283_v33 = vpop.f32.mrf.mxu1 }
 0x26f   : > { %1359 = vst [vmem:[#allocation4 + $0xa0] sm:$0xff] %v1321_v31 }
 0x270   : > { %1336 = vst [vmem:[#allocation4 + $0x68] sm:$0xff] %v1263_v32 }
 0x271   : > { %1344 = vst [vmem:[#allocation4 + $0xf0] sm:$0xff] %v1283_v33 }
 0x275   : > { %v1303_v34 = vpop.f32.mrf.mxu2  ;;  %v1323_v35 = vpop.f32.mrf.mxu3 }
 0x276   : > { %1352 = vst [vmem:[#allocation4 + $0x90] sm:$0xff] %v1303_v34  ;;  %v1266_v37 = vpop.f32.mrf.mxu0  ;;  %v1286_v38 = vpop.f32.mrf.mxu1 }
 0x277   : > { %1360 = vst [vmem:[#allocation4 + $0xf8] sm:$0xff] %v1323_v35 }
 0x278   : > { %1337 = vst [vmem:[#allocation4 + $0x30] sm:$0xff] %v1266_v37 }
 0x279   : > { %1345 = vst [vmem:[#allocation4 + $0x8] sm:$0xff] %v1286_v38 }
 0x27d   : > { %v1306_v9 = vpop.f32.mrf.mxu2  ;;  %v1326_v30 = vpop.f32.mrf.mxu3 }
 0x27e   : > { %1353 = vst [vmem:[#allocation4 + $0x70] sm:$0xff] %v1306_v9  ;;  %v1268_v39 = vpop.f32.mrf.mxu0  ;;  %v1288_v40 = vpop.f32.mrf.mxu1 }
 0x27f   : > { %1361 = vst [vmem:[#allocation4 + $0x20] sm:$0xff] %v1326_v30 }
 0x280   : > { %1338 = vst [vmem:[#allocation4 + $0x48] sm:$0xff] %v1268_v39 }
 0x281   : > { %1346 = vst [vmem:[#allocation4 + $0x78] sm:$0xff] %v1288_v40 }
 0x285   : > { %v1308_v41 = vpop.f32.mrf.mxu2  ;;  %v1328_v43 = vpop.f32.mrf.mxu3 }
 0x286   : > { %1354 = vst [vmem:[#allocation4 + $0xc0] sm:$0xff] %v1308_v41 }
 0x287   : > { %1362 = vst [vmem:[#allocation4 + $0x98] sm:$0xff] %v1328_v43 }
 0x288 PF: > { %v1409_v44 = vld [vmem:[#allocation4 + $0x8] sm:$0xff]  ;;  %v1410_v46 = vld [vmem:[#allocation4 + $0x78] sm:$0xff]  ;;  %v1425_v20 = vld [vmem:[#allocation4 + $0x20] sm:$0xff]  ;;  %p2697_p13 = scmp.ge.s32.totalorder %s3148_s19, 2 }
 0x289   : > { %v1434_v36 = vpack.c.bf16 %v1410_v46, %v1409_v44  ;;  %v1407_v48 = vld [vmem:[#allocation4 + $0x60] sm:$0xff]  ;;  %v1408_v50 = vld [vmem:[#allocation4 + $0xf0] sm:$0xff]  ;;  %v1424_v53 = vld [vmem:[#allocation4 + $0xf8] sm:$0xff] }
 0x28a   : > { %v1423_v52 = vld [vmem:[#allocation4 + $0xa0] sm:$0xff]  ;;  %v1433_v23 = vpack.c.bf16 %v1408_v50, %v1407_v48  ;;  %v1405_v54 = vld [vmem:[#allocation4 + $0xe8] sm:$0xff]  ;;  %v1406_v57 = vld [vmem:[#allocation4 + $0xb8] sm:$0xff] }
 0x28b   : > { %1607 = vmatpush.bf16.msra.mxu0 %v1434_v36  ;;  %2880 = vmatpush.bf16.msra.mxu2 %v1434_v36  ;;  %v1441_v42 = vpack.c.bf16 %v1424_v53, %v1423_v52  ;;  %v1421_v58 = vld [vmem:[#allocation4 + $0x10] sm:$0xff]  ;;  %v1422_v59 = vld [vmem:[#allocation4 + $0x28] sm:$0xff]  ;;  %v1432_v60 = vpack.c.bf16 %v1406_v57, %v1405_v54  ;;  %v1403_v49 = vld [vmem:[#allocation4 + $0x80] sm:$0xff] }
 0x28c   : > { %v1440_v45 = vpack.c.bf16 %v1422_v59, %v1421_v58  ;;  %v1404_v61 = vld [vmem:[#allocation4 + $0x88] sm:$0xff]  ;;  %v1420_v0 = vld [vmem:[#allocation4 + $0xd0] sm:$0xff]  ;;  %v1415_v6 = vld [vmem:[#allocation4 + $0xe0] sm:$0xff] }
 0x28d   : > { %v1419_v63 = vld [vmem:[#allocation4 + $0xa8] sm:$0xff]  ;;  %v1431_v1 = vpack.c.bf16 %v1404_v61, %v1403_v49  ;;  %v1401_v4 = vld [vmem:[#allocation4 + $0x30] sm:$0xff]  ;;  %v1418_v56 = vld [vmem:[#allocation4 + $0xc0] sm:$0xff] }
 0x28e   : > { %v1426_v47 = vld [vmem:[#allocation4 + $0x98] sm:$0xff]  ;;  %v1439_v3 = vpack.c.bf16 %v1420_v0, %v1419_v63  ;;  %v1402_v7 = vld [vmem:[#allocation4 + $0x48] sm:$0xff]  ;;  %v1417_v55 = vld [vmem:[#allocation4 + $0x70] sm:$0xff] }
 0x28f   : > { %v1442_v51 = vpack.c.bf16 %v1426_v47, %v1425_v20  ;;  %1608 = vmatpush.bf16.msra.mxu0 %v1433_v23  ;;  %2881 = vmatpush.bf16.msra.mxu2 %v1433_v23  ;;  %v1430_v5 = vpack.c.bf16 %v1402_v7, %v1401_v4  ;;  %v1438_v8 = vpack.c.bf16 %v1418_v56, %v1417_v55  ;;  %v1399_v10 = vld [vmem:[#allocation4 + $0x50] sm:$0xff]  ;;  %v1400_v12 = vld [vmem:[#allocation4 + $0x68] sm:$0xff]  ;;  %v1397_v16 = vld [vmem:[#allocation4 + $0xd8] sm:$0xff] }
 0x290   : > { %v1416_v62 = vld [vmem:[#allocation4 + $0x90] sm:$0xff]  ;;  %v1429_v11 = vpack.c.bf16 %v1400_v12, %v1399_v10  ;;  %v1398_v14 = vld [vmem:[#allocation4 + $0x18] sm:$0xff]  ;;  %v1413_v19 = vld [vmem:[#allocation4 + $0x40] sm:$0xff] }
 0x291   : > { %1696 = vmatpush.bf16.msra.mxu1 %v1442_v51  ;;  %2888 = vmatpush.bf16.msra.mxu3 %v1442_v51  ;;  %v1437_v15 = vpack.c.bf16 %v1416_v62, %v1415_v6  ;;  %v1414_v21 = vld [vmem:[#allocation4 + $0xc8] sm:$0xff]  ;;  %v1428_v18 = vpack.c.bf16 %v1398_v14, %v1397_v16  ;;  %v1395_v2 = vld [vmem:[#allocation4 + $0xb0] sm:$0xff]  ;;  %v1396_v13 = vld [vmem:[#allocation4] sm:$0xff] }
 0x292   : > { %v1436_v24 = vpack.c.bf16 %v1414_v21, %v1413_v19  ;;  %v1411_v17 = vld [vmem:[#allocation4 + $0x38] sm:$0xff]  ;;  %v2571_v25 = vld [vmem:[#allocation2] sm:$0xf]  ;;  %v2801_v26 = vld [vmem:[#allocation2 + $0x4] sm:$0xf0]  ;;  %v1427_v27 = vpack.c.bf16 %v1396_v13, %v1395_v2 }
 0x293   : > { %1609 = vmatpush.bf16.msra.mxu0 %v1432_v60  ;;  %2882 = vmatpush.bf16.msra.mxu2 %v1432_v60  ;;  %v1412_v22 = vld [vmem:[#allocation4 + $0x58] sm:$0xff]  ;;  %v2635_v28 = vld [vmem:[#allocation2 + $0x80] sm:$0xf]  ;;  %v2817_v29 = vld [vmem:[#allocation2 + $0x84] sm:$0xf0]  ;;  %v2572_v37 = vor.u32 %v2801_v26, %v2571_v25 }
 0x294   : > { %v2800_v31 = vld [vmem:[#allocation2 + $0x4] sm:$0xf]  ;;  %v1435_v32 = vpack.c.bf16 %v1412_v22, %v1411_v17  ;;  %v2573_v33 = vld [vmem:[#allocation2 + $0x8] sm:$0xf0]  ;;  %v2636_v38 = vor.u32 %v2817_v29, %v2635_v28  ;;  %v2579_v39 = vld [vmem:[#allocation2 + $0x10] sm:$0xf] }
 0x295   : > { %1697 = vmatpush.bf16.msra.mxu1 %v1441_v42  ;;  %2889 = vmatpush.bf16.msra.mxu3 %v1441_v42  ;;  %v2816_v34 = vld [vmem:[#allocation2 + $0x84] sm:$0xf]  ;;  %v2637_v35 = vld [vmem:[#allocation2 + $0x88] sm:$0xf0]  ;;  %v2576_v9 = vor.u32 %v2800_v31, %v2573_v33  ;;  %v2803_v40 = vld [vmem:[#allocation2 + $0x14] sm:$0xf0] }
 0x296   : > { %v2640_v30 = vor.u32 %v2816_v34, %v2637_v35  ;;  %v2643_v41 = vld [vmem:[#allocation2 + $0x90] sm:$0xf]  ;;  %v2819_v43 = vld [vmem:[#allocation2 + $0x94] sm:$0xf0]  ;;  %v2802_v44 = vld [vmem:[#allocation2 + $0x14] sm:$0xf]  ;;  %v2580_v47 = vor.u32 %v2803_v40, %v2579_v39 }
 0x297   : > { %1610 = vmatpush.bf16.msra.mxu0 %v1431_v1  ;;  %2883 = vmatpush.bf16.msra.mxu2 %v1431_v1  ;;  %v2581_v46 = vld [vmem:[#allocation2 + $0x18] sm:$0xf0]  ;;  %v2818_v20 = vld [vmem:[#allocation2 + $0x94] sm:$0xf]  ;;  %v2644_v48 = vor.u32 %v2819_v43, %v2643_v41  ;;  %v2587_v52 = vld [vmem:[#allocation2 + $0x20] sm:$0xf] }
 0x298   : > { %v2645_v36 = vld [vmem:[#allocation2 + $0x98] sm:$0xf0]  ;;  %v2584_v50 = vor.u32 %v2802_v44, %v2581_v46  ;;  %v2805_v53 = vld [vmem:[#allocation2 + $0x24] sm:$0xf0]  ;;  %v2651_v23 = vld [vmem:[#allocation2 + $0xa0] sm:$0xf] }
 0x299   : > { %1698 = vmatpush.bf16.msra.mxu1 %v1440_v45  ;;  %2890 = vmatpush.bf16.msra.mxu3 %v1440_v45  ;;  %v2648_v51 = vor.u32 %v2818_v20, %v2645_v36  ;;  %v2821_v42 = vld [vmem:[#allocation2 + $0xa4] sm:$0xf0]  ;;  %v2804_v54 = vld [vmem:[#allocation2 + $0x24] sm:$0xf]  ;;  %v2589_v57 = vld [vmem:[#allocation2 + $0x28] sm:$0xf0]  ;;  %v2588_v60 = vor.u32 %v2805_v53, %v2587_v52 }
 0x29a   : > { %v2820_v58 = vld [vmem:[#allocation2 + $0xa4] sm:$0xf]  ;;  %v2653_v59 = vld [vmem:[#allocation2 + $0xa8] sm:$0xf0]  ;;  %v2652_v45 = vor.u32 %v2821_v42, %v2651_v23  ;;  %v2592_v49 = vor.u32 %v2804_v54, %v2589_v57  ;;  %v2595_v63 = vld [vmem:[#allocation2 + $0x30] sm:$0xf] }
 0x29b   : > { %1611 = vmatpush.bf16.msra.mxu0 %v1430_v5  ;;  %2884 = vmatpush.bf16.msra.mxu2 %v1430_v5  ;;  %v2656_v61 = vor.u32 %v2820_v58, %v2653_v59  ;;  %v2807_v0 = vld [vmem:[#allocation2 + $0x34] sm:$0xf0]  ;;  %v2659_v1 = vld [vmem:[#allocation2 + $0xb0] sm:$0xf]  ;;  %v2806_v4 = vld [vmem:[#allocation2 + $0x34] sm:$0xf] }
 0x29c   : > { %v2597_v7 = vld [vmem:[#allocation2 + $0x38] sm:$0xf0]  ;;  %v2822_v55 = vld [vmem:[#allocation2 + $0xb4] sm:$0xf]  ;;  %v2596_v5 = vor.u32 %v2807_v0, %v2595_v63  ;;  %v2603_v6 = vld [vmem:[#allocation2 + $0x40] sm:$0xf] }
 0x29d   : > { %1699 = vmatpush.bf16.msra.mxu1 %v1439_v3  ;;  %2891 = vmatpush.bf16.msra.mxu3 %v1439_v3  ;;  %v2823_v3 = vld [vmem:[#allocation2 + $0xb4] sm:$0xf0]  ;;  %v2661_v56 = vld [vmem:[#allocation2 + $0xb8] sm:$0xf0]  ;;  %v2600_v10 = vor.u32 %v2806_v4, %v2597_v7  ;;  %v2809_v62 = vld [vmem:[#allocation2 + $0x44] sm:$0xf0] }
 0x29e   : > { %v2664_v12 = vor.u32 %v2822_v55, %v2661_v56  ;;  %v2808_v16 = vld [vmem:[#allocation2 + $0x44] sm:$0xf]  ;;  %v2605_v14 = vld [vmem:[#allocation2 + $0x48] sm:$0xf0]  ;;  %v2611_v17 = vld [vmem:[#allocation2 + $0x50] sm:$0xf] }
 0x29f   : > { %1612 = vmatpush.bf16.msra.mxu0 %v1429_v11  ;;  %2885 = vmatpush.bf16.msra.mxu2 %v1429_v11  ;;  %v2667_v11 = vld [vmem:[#allocation2 + $0xc0] sm:$0xf]  ;;  %v2824_v19 = vld [vmem:[#allocation2 + $0xc4] sm:$0xf]  ;;  %v2669_v21 = vld [vmem:[#allocation2 + $0xc8] sm:$0xf0]  ;;  %v2608_v2 = vor.u32 %v2808_v16, %v2605_v14 }
 0x2a0   : > { %v2672_v13 = vor.u32 %v2824_v19, %v2669_v21  ;;  %v2811_v22 = vld [vmem:[#allocation2 + $0x54] sm:$0xf0]  ;;  %v2675_v25 = vld [vmem:[#allocation2 + $0xd0] sm:$0xf]  ;;  %v2613_v28 = vld [vmem:[#allocation2 + $0x58] sm:$0xf0] }
 0x2a1   : > { %1700 = vmatpush.bf16.msra.mxu1 %v1438_v8  ;;  %2892 = vmatpush.bf16.msra.mxu3 %v1438_v8  ;;  %v2660_v8 = vor.u32 %v2823_v3, %v2659_v1  ;;  %v2827_v26 = vld [vmem:[#allocation2 + $0xd4] sm:$0xf0]  ;;  %v2826_v29 = vld [vmem:[#allocation2 + $0xd4] sm:$0xf]  ;;  %v2677_v31 = vld [vmem:[#allocation2 + $0xd8] sm:$0xf0] }
 0x2a2   : > { %v2676_v33 = vor.u32 %v2827_v26, %v2675_v25  ;;  %v2680_v35 = vor.u32 %v2826_v29, %v2677_v31  ;;  %v2812_v39 = vld [vmem:[#allocation2 + $0x64] sm:$0xf]  ;;  %v2621_v40 = vld [vmem:[#allocation2 + $0x68] sm:$0xf0]  ;;  %v2814_v52 = vld [vmem:[#allocation2 + $0x74] sm:$0xf] }
 0x2a3   : > { %1613 = vmatpush.bf16.msra.mxu0 %v1428_v18  ;;  %2886 = vmatpush.bf16.msra.mxu2 %v1428_v18  ;;  %v2604_v18 = vor.u32 %v2809_v62, %v2603_v6  ;;  %v2828_v41 = vld [vmem:[#allocation2 + $0xe4] sm:$0xf]  ;;  %v2685_v43 = vld [vmem:[#allocation2 + $0xe8] sm:$0xf0]  ;;  %v2624_v20 = vor.u32 %v2812_v39, %v2621_v40  ;;  %v2629_v53 = vld [vmem:[#allocation2 + $0x78] sm:$0xf0] }
 0x2a4   : > { %v2688_v36 = vor.u32 %v2828_v41, %v2685_v43  ;;  %v2830_v23 = vld [vmem:[#allocation2 + $0xf4] sm:$0xf]  ;;  %v2693_v42 = vld [vmem:[#allocation2 + $0xf8] sm:$0xf0]  ;;  %v2632_v58 = vor.u32 %v2814_v52, %v2629_v53 }
 0x2a5   : > { %1701 = vmatpush.bf16.msra.mxu1 %v1437_v15  ;;  %2893 = vmatpush.bf16.msra.mxu3 %v1437_v15  ;;  %v2825_v15 = vld [vmem:[#allocation2 + $0xc4] sm:$0xf0]  ;;  %v2696_v59 = vor.u32 %v2830_v23, %v2693_v42 }
 0x2a7   : > { %1614 = vmatpush.bf16.msra.mxu0 %v1427_v27  ;;  %2887 = vmatpush.bf16.msra.mxu2 %v1427_v27  ;;  %v2810_v27 = vld [vmem:[#allocation2 + $0x54] sm:$0xf] }
 0x2a8   : > { %v2616_v34 = vor.u32 %v2810_v27, %v2613_v28 }
 0x2a9   : > { %1702 = vmatpush.bf16.msra.mxu1 %v1436_v24  ;;  %2894 = vmatpush.bf16.msra.mxu3 %v1436_v24  ;;  %v2668_v24 = vor.u32 %v2825_v15, %v2667_v11 }
 0x2aa   : > { %1615 = vmatmul.bf16.vlgmr.msra.gmra.mxu0 %v2572_v37  ;;  %1655 = vmatmul.bf16.vlgmr.msra.gmra.mxu2 %v2636_v38  ;;  %v2619_v37 = vld [vmem:[#allocation2 + $0x60] sm:$0xf]  ;;  %v2813_v38 = vld [vmem:[#allocation2 + $0x64] sm:$0xf0] }
 0x2ab   : > { %v2620_v44 = vor.u32 %v2813_v38, %v2619_v37 }
 0x2ad   : > { %1703 = vmatpush.bf16.msra.mxu1 %v1435_v32  ;;  %2895 = vmatpush.bf16.msra.mxu3 %v1435_v32  ;;  %v2612_v32 = vor.u32 %v2811_v22, %v2611_v17 }
 0x2b0   : > { %1704 = vmatmul.bf16.vlgmr.msra.gmra.mxu1 %v2576_v9  ;;  %1744 = vmatmul.bf16.vlgmr.msra.gmra.mxu3 %v2640_v30  ;;  %v2683_v9 = vld [vmem:[#allocation2 + $0xe0] sm:$0xf]  ;;  %v2829_v30 = vld [vmem:[#allocation2 + $0xe4] sm:$0xf0] }
 0x2b1   : > { %v2684_v46 = vor.u32 %v2829_v30, %v2683_v9 }
 0x2ba   : > { %1620 = vmatmul.bf16.gmra.mxu0 %v2580_v47  ;;  %1660 = vmatmul.bf16.gmra.mxu2 %v2644_v48  ;;  %v2627_v47 = vld [vmem:[#allocation2 + $0x70] sm:$0xf]  ;;  %v2815_v48 = vld [vmem:[#allocation2 + $0x74] sm:$0xf0] }
 0x2bb   : > { %v2628_v54 = vor.u32 %v2815_v48, %v2627_v47 }
 0x2c0   : > { %1709 = vmatmul.bf16.gmra.mxu1 %v2584_v50  ;;  %1749 = vmatmul.bf16.gmra.mxu3 %v2648_v51  ;;  %v2691_v50 = vld [vmem:[#allocation2 + $0xf0] sm:$0xf]  ;;  %v2831_v51 = vld [vmem:[#allocation2 + $0xf4] sm:$0xf0] }
 0x2c1   : > { %v2692_v57 = vor.u32 %v2831_v51, %v2691_v50 }
 0x2ca   : > { %1625 = vmatmul.bf16.gmra.mxu0 %v2588_v60  ;;  %1665 = vmatmul.bf16.gmra.mxu2 %v2652_v45  ;;  %v3368_v60 = vld [vmem:[%s172_s5] ss:$0 sm:$0xff] }
 0x2d0   : > { %1714 = vmatmul.bf16.gmra.mxu1 %v2592_v49  ;;  %1754 = vmatmul.bf16.gmra.mxu3 %v2656_v61 }
 0x2da   : > { %1630 = vmatmul.bf16.gmra.mxu0 %v2596_v5  ;;  %1670 = vmatmul.bf16.gmra.mxu2 %v2660_v8 }
 0x2e0   : > { %1719 = vmatmul.bf16.gmra.mxu1 %v2600_v10  ;;  %1759 = vmatmul.bf16.gmra.mxu3 %v2664_v12 }
 0x2ea   : > { %1635 = vmatmul.bf16.gmra.mxu0 %v2604_v18  ;;  %1675 = vmatmul.bf16.gmra.mxu2 %v2668_v24 }
 0x2f0   : > { %1724 = vmatmul.bf16.gmra.mxu1 %v2608_v2  ;;  %1764 = vmatmul.bf16.gmra.mxu3 %v2672_v13 }
 0x2fa   : > { %1640 = vmatmul.bf16.gmra.mxu0 %v2612_v32  ;;  %1680 = vmatmul.bf16.gmra.mxu2 %v2676_v33 }
 0x300   : > { %1729 = vmatmul.bf16.gmra.mxu1 %v2616_v34  ;;  %1769 = vmatmul.bf16.gmra.mxu3 %v2680_v35 }
 0x30a   : > { %1645 = vmatmul.bf16.gmra.mxu0 %v2620_v44  ;;  %1685 = vmatmul.bf16.gmra.mxu2 %v2684_v46 }
 0x310   : > { %1734 = vmatmul.bf16.gmra.mxu1 %v2624_v20  ;;  %1774 = vmatmul.bf16.gmra.mxu3 %v2688_v36 }
 0x31a   : > { %1650 = vmatmul.bf16.gmra.mxu0 %v2628_v54  ;;  %1690 = vmatmul.bf16.gmra.mxu2 %v2692_v57 }
 0x320   : > { %1739 = vmatmul.bf16.gmra.mxu1 %v2632_v58  ;;  %1779 = vmatmul.bf16.gmra.mxu3 %v2696_v59 }
 0x327   : > { %v1616_v45 = vpop.f32.mrf.mxu0 }
 0x328   : > { %v1617_v49 = vadd.f32 %v3368_v60, %v1616_v45 }
 0x32d   : > { %v1705_v61 = vpop.f32.mrf.mxu1  ;;  %v1656_v0 = vpop.f32.mrf.mxu2 }
 0x32e   : > { %v3371_v63 = vadd.f32 %v1705_v61, %v1617_v49  ;;  %v1657_v1 = vadd.f32 %v3368_v60, %v1656_v0 }
 0x32f   : > { %v1618_v4 = vpop.f32.mrf.mxu0 }
 0x330   : > { %1785 = vst [vmem:[%s3245_s7] sm:$0xff] %v3371_v63  ;;  %v1619_v55 = vadd.f32 %v3368_v60, %v1618_v4 }
 0x333   : > { %v1745_v3 = vpop.f32.mrf.mxu3 }
 0x334   : > { %v3376_v7 = vadd.f32 %v1745_v3, %v1657_v1 }
 0x335   : > { %v1707_v56 = vpop.f32.mrf.mxu1  ;;  %v1658_v8 = vpop.f32.mrf.mxu2 }
 0x336   : > { %1801 = vst [vmem:[%s3245_s7 + $0x80] sm:$0xff] %v3376_v7  ;;  %v3381_v5 = vadd.f32 %v1707_v56, %v1619_v55  ;;  %v1659_v10 = vadd.f32 %v3368_v60, %v1658_v8 }
 0x337   : > { %v1621_v6 = vpop.f32.mrf.mxu0 }
 0x338   : > { %1786 = vst [vmem:[%s3245_s7 + $0x8] sm:$0xff] %v3381_v5  ;;  %v1622_v11 = vadd.f32 %v3368_v60, %v1621_v6 }
 0x33b   : > { %v1747_v12 = vpop.f32.mrf.mxu3 }
 0x33c   : > { %v3386_v62 = vadd.f32 %v1747_v12, %v1659_v10 }
 0x33d   : > { %v1710_v15 = vpop.f32.mrf.mxu1  ;;  %v1661_v14 = vpop.f32.mrf.mxu2 }
 0x33e   : > { %1802 = vst [vmem:[%s3245_s7 + $0x88] sm:$0xff] %v3386_v62  ;;  %v3391_v16 = vadd.f32 %v1710_v15, %v1622_v11  ;;  %v1662_v19 = vadd.f32 %v3368_v60, %v1661_v14 }
 0x33f   : > { %v1623_v18 = vpop.f32.mrf.mxu0 }
 0x340   : > { %1787 = vst [vmem:[%s3245_s7 + $0x10] sm:$0xff] %v3391_v16  ;;  %v1624_v2 = vadd.f32 %v3368_v60, %v1623_v18 }
 0x343   : > { %v1750_v21 = vpop.f32.mrf.mxu3 }
 0x344   : > { %v3396_v24 = vadd.f32 %v1750_v21, %v1662_v19 }
 0x345   : > { %v1712_v13 = vpop.f32.mrf.mxu1  ;;  %v1663_v22 = vpop.f32.mrf.mxu2 }
 0x346   : > { %1803 = vst [vmem:[%s3245_s7 + $0x90] sm:$0xff] %v3396_v24  ;;  %v3401_v17 = vadd.f32 %v1712_v13, %v1624_v2  ;;  %v1664_v25 = vadd.f32 %v3368_v60, %v1663_v22 }
 0x347   : > { %v1626_v27 = vpop.f32.mrf.mxu0 }
 0x348   : > { %1788 = vst [vmem:[%s3245_s7 + $0x18] sm:$0xff] %v3401_v17  ;;  %v1627_v29 = vadd.f32 %v3368_v60, %v1626_v27 }
 0x34b   : > { %v1752_v26 = vpop.f32.mrf.mxu3 }
 0x34c   : > { %v3406_v28 = vadd.f32 %v1752_v26, %v1664_v25 }
 0x34d   : > { %v1715_v31 = vpop.f32.mrf.mxu1  ;;  %v1666_v33 = vpop.f32.mrf.mxu2 }
 0x34e   : > { %1804 = vst [vmem:[%s3245_s7 + $0x98] sm:$0xff] %v3406_v28  ;;  %v3411_v32 = vadd.f32 %v1715_v31, %v1627_v29  ;;  %v1667_v34 = vadd.f32 %v3368_v60, %v1666_v33 }
 0x34f   : > { %v1628_v37 = vpop.f32.mrf.mxu0 }
 0x350   : > { %1789 = vst [vmem:[%s3245_s7 + $0x20] sm:$0xff] %v3411_v32  ;;  %v1629_v9 = vadd.f32 %v3368_v60, %v1628_v37 }
 0x353   : > { %v1755_v35 = vpop.f32.mrf.mxu3 }
 0x354   : > { %v3416_v38 = vadd.f32 %v1755_v35, %v1667_v34 }
 0x355   : > { %v1717_v30 = vpop.f32.mrf.mxu1  ;;  %v1668_v40 = vpop.f32.mrf.mxu2 }
 0x356   : > { %1805 = vst [vmem:[%s3245_s7 + $0xa0] sm:$0xff] %v3416_v38  ;;  %v3421_v39 = vadd.f32 %v1717_v30, %v1629_v9  ;;  %v1669_v41 = vadd.f32 %v3368_v60, %v1668_v40 }
 0x357   : > { %v1631_v44 = vpop.f32.mrf.mxu0 }
 0x358   : > { %1790 = vst [vmem:[%s3245_s7 + $0x28] sm:$0xff] %v3421_v39  ;;  %v1632_v20 = vadd.f32 %v3368_v60, %v1631_v44 }
 0x35b   : > { %v1757_v43 = vpop.f32.mrf.mxu3 }
 0x35c   : > { %v3426_v46 = vadd.f32 %v1757_v43, %v1669_v41 }
 0x35d   : > { %v1720_v36 = vpop.f32.mrf.mxu1  ;;  %v1671_v48 = vpop.f32.mrf.mxu2 }
 0x35e   : > { %1806 = vst [vmem:[%s3245_s7 + $0xa8] sm:$0xff] %v3426_v46  ;;  %v3431_v47 = vadd.f32 %v1720_v36, %v1632_v20  ;;  %v1672_v50 = vadd.f32 %v3368_v60, %v1671_v48 }
 0x35f   : > { %v1633_v52 = vpop.f32.mrf.mxu0 }
 0x360   : > { %1791 = vst [vmem:[%s3245_s7 + $0x30] sm:$0xff] %v3431_v47  ;;  %v1634_v23 = vadd.f32 %v3368_v60, %v1633_v52 }
 0x363   : > { %v1760_v51 = vpop.f32.mrf.mxu3 }
 0x364   : > { %v3436_v53 = vadd.f32 %v1760_v51, %v1672_v50 }
 0x365   : > { %v1722_v42 = vpop.f32.mrf.mxu1  ;;  %v1673_v57 = vpop.f32.mrf.mxu2 }
 0x366   : > { %1807 = vst [vmem:[%s3245_s7 + $0xb0] sm:$0xff] %v3436_v53  ;;  %v3441_v54 = vadd.f32 %v1722_v42, %v1634_v23  ;;  %v1674_v58 = vadd.f32 %v3368_v60, %v1673_v57 }
 0x367   : > { %v1636_v45 = vpop.f32.mrf.mxu0 }
 0x368   : > { %1792 = vst [vmem:[%s3245_s7 + $0x38] sm:$0xff] %v3441_v54  ;;  %v1637_v61 = vadd.f32 %v3368_v60, %v1636_v45 }
 0x36b   : > { %v1762_v59 = vpop.f32.mrf.mxu3 }
 0x36c   : > { %v3446_v49 = vadd.f32 %v1762_v59, %v1674_v58 }
 0x36d   : > { %v1725_v0 = vpop.f32.mrf.mxu1  ;;  %v1676_v3 = vpop.f32.mrf.mxu2 }
 0x36e   : > { %1808 = vst [vmem:[%s3245_s7 + $0xb8] sm:$0xff] %v3446_v49  ;;  %v3451_v1 = vadd.f32 %v1725_v0, %v1637_v61  ;;  %v1677_v4 = vadd.f32 %v3368_v60, %v1676_v3 }
 0x36f   : > { %v1638_v56 = vpop.f32.mrf.mxu0 }
 0x370   : > { %1793 = vst [vmem:[%s3245_s7 + $0x40] sm:$0xff] %v3451_v1  ;;  %v1639_v10 = vadd.f32 %v3368_v60, %v1638_v56 }
 0x373   : > { %v1765_v55 = vpop.f32.mrf.mxu3 }
 0x374   : > { %v3456_v8 = vadd.f32 %v1765_v55, %v1677_v4 }
 0x375   : > { %v1727_v12 = vpop.f32.mrf.mxu1  ;;  %v1678_v11 = vpop.f32.mrf.mxu2 }
 0x376   : > { %1809 = vst [vmem:[%s3245_s7 + $0xc0] sm:$0xff] %v3456_v8  ;;  %v3461_v6 = vadd.f32 %v1727_v12, %v1639_v10  ;;  %v1679_v15 = vadd.f32 %v3368_v60, %v1678_v11 }
 0x377   : > { %v1641_v19 = vpop.f32.mrf.mxu0 }
 0x378   : > { %1794 = vst [vmem:[%s3245_s7 + $0x48] sm:$0xff] %v3461_v6  ;;  %v1642_v18 = vadd.f32 %v3368_v60, %v1641_v19 }
 0x37b   : > { %v1767_v14 = vpop.f32.mrf.mxu3 }
 0x37c   : > { %v3466_v21 = vadd.f32 %v1767_v14, %v1679_v15 }
 0x37d   : > { %v1730_v2 = vpop.f32.mrf.mxu1  ;;  %v1681_v22 = vpop.f32.mrf.mxu2 }
 0x37e   : > { %1810 = vst [vmem:[%s3245_s7 + $0xc8] sm:$0xff] %v3466_v21  ;;  %v3471_v13 = vadd.f32 %v1730_v2, %v1642_v18  ;;  %v1682_v25 = vadd.f32 %v3368_v60, %v1681_v22 }
 0x37f   : > { %v1643_v27 = vpop.f32.mrf.mxu0 }
 0x380   : > { %1795 = vst [vmem:[%s3245_s7 + $0x50] sm:$0xff] %v3471_v13  ;;  %v1644_v31 = vadd.f32 %v3368_v60, %v1643_v27 }
 0x383   : > { %v1770_v26 = vpop.f32.mrf.mxu3 }
 0x384   : > { %v3476_v29 = vadd.f32 %v1770_v26, %v1682_v25 }
 0x385   : > { %v1732_v33 = vpop.f32.mrf.mxu1  ;;  %v1683_v35 = vpop.f32.mrf.mxu2 }
 0x386   : > { %1811 = vst [vmem:[%s3245_s7 + $0xd0] sm:$0xff] %v3476_v29  ;;  %v3481_v34 = vadd.f32 %v1732_v33, %v1644_v31  ;;  %v1684_v37 = vadd.f32 %v3368_v60, %v1683_v35 }
 0x387   : > { %v1646_v30 = vpop.f32.mrf.mxu0 }
 0x388   : > { %1796 = vst [vmem:[%s3245_s7 + $0x58] sm:$0xff] %v3481_v34  ;;  %v1647_v41 = vadd.f32 %v3368_v60, %v1646_v30 }
 0x38b   : > { %v1772_v9 = vpop.f32.mrf.mxu3 }
 0x38c   : > { %v3486_v40 = vadd.f32 %v1772_v9, %v1684_v37 }
 0x38d   : > { %v1735_v43 = vpop.f32.mrf.mxu1  ;;  %v1686_v20 = vpop.f32.mrf.mxu2 }
 0x38e   : > { %1812 = vst [vmem:[%s3245_s7 + $0xd8] sm:$0xff] %v3486_v40  ;;  %v3491_v44 = vadd.f32 %v1735_v43, %v1647_v41  ;;  %v1687_v36 = vadd.f32 %v3368_v60, %v1686_v20 }
 0x38f   : > { %v1648_v50 = vpop.f32.mrf.mxu0 }
 0x390   : > { %1797 = vst [vmem:[%s3245_s7 + $0x60] sm:$0xff] %v3491_v44  ;;  %v1649_v52 = vadd.f32 %v3368_v60, %v1648_v50 }
 0x393   : > { %v1775_v48 = vpop.f32.mrf.mxu3 }
 0x394   : > { %v3496_v51 = vadd.f32 %v1775_v48, %v1687_v36 }
 0x395   : > { %v1737_v23 = vpop.f32.mrf.mxu1  ;;  %v1688_v57 = vpop.f32.mrf.mxu2 }
 0x396   : > { %1813 = vst [vmem:[%s3245_s7 + $0xe0] sm:$0xff] %v3496_v51  ;;  %v3501_v42 = vadd.f32 %v1737_v23, %v1649_v52  ;;  %v1689_v58 = vadd.f32 %v3368_v60, %v1688_v57 }
 0x397   : > { %v1651_v45 = vpop.f32.mrf.mxu0 }
 0x398   : > { %1798 = vst [vmem:[%s3245_s7 + $0x68] sm:$0xff] %v3501_v42  ;;  %v1652_v0 = vadd.f32 %v3368_v60, %v1651_v45 }
 0x39b   : > { %v1777_v59 = vpop.f32.mrf.mxu3 }
 0x39c   : > { %v3506_v61 = vadd.f32 %v1777_v59, %v1689_v58 }
 0x39d   : > { %v1740_v3 = vpop.f32.mrf.mxu1  ;;  %v1691_v55 = vpop.f32.mrf.mxu2 }
 0x39e   : > { %1814 = vst [vmem:[%s3245_s7 + $0xe8] sm:$0xff] %v3506_v61  ;;  %v3511_v4 = vadd.f32 %v1740_v3, %v1652_v0  ;;  %v1692_v56 = vadd.f32 %v3368_v60, %v1691_v55 }
 0x39f   : > { %v1653_v12 = vpop.f32.mrf.mxu0 }
 0x3a0   : > { %1799 = vst [vmem:[%s3245_s7 + $0x70] sm:$0xff] %v3511_v4  ;;  %v1654_v15 = vadd.f32 %v3368_v60, %v1653_v12 }
 0x3a3   : > { %v1780_v10 = vpop.f32.mrf.mxu3 }
 0x3a4   : > { %v3516_v11 = vadd.f32 %v1780_v10, %v1692_v56 }
 0x3a5   : > { %v1742_v14 = vpop.f32.mrf.mxu1  ;;  %v1693_v18 = vpop.f32.mrf.mxu2 }
 0x3a6   : > { %1815 = vst [vmem:[%s3245_s7 + $0xf0] sm:$0xff] %v3516_v11  ;;  %v1743_v19 = vadd.f32 %v1742_v14, %v1654_v15  ;;  %v1694_v2 = vadd.f32 %v3368_v60, %v1693_v18 }
 0x3a8   : > { %1800 = vst [vmem:[%s3245_s7 + $0x78] sm:$0xff] %v1743_v19 }
 0x3aa   : > { %1820 = sbr.rel (%p2697_p13) target bundleno = 979 (0x3d3), region = 56 }
 0x3ab   : > { %v1782_v22 = vpop.f32.mrf.mxu3 }
 0x3ac   : > { %v3523_v25 = vadd.f32 %v1782_v22, %v1694_v2 }
 0x3ae   : > { %1816 = vst [vmem:[%s3245_s7 + $0xf8] sm:$0xff] %v3523_v25 }
 0x3af   : > { %v1821_v26 = vmax.f32 %v3371_v63, 0.0  ;;  %v1822_v27 = vmax.f32 %v3381_v5, 0.0  ;;  %v1823_v31 = vmax.f32 %v3391_v16, 0.0  ;;  %v1824_v33 = vmax.f32 %v3401_v17, 0.0 }
 0x3b0   : > { %v1825_v35 = vmax.f32 %v3411_v32, 0.0  ;;  %v1826_v60 = vmax.f32 %v3421_v39, 0.0  ;;  %v1827_v41 = vmax.f32 %v3431_v47, 0.0  ;;  %v1828_v20 = vmax.f32 %v3441_v54, 0.0 }
 0x3b1   : > { %v1853_v37 = vpack.c.bf16 %v1821_v26, %v1821_v26  ;;  %v1854_v9 = vpack.c.bf16 %v1822_v27, %v1822_v27  ;;  %v1855_v30 = vpack.c.bf16 %v1823_v31, %v1823_v31  ;;  %v1856_v43 = vpack.c.bf16 %v1824_v33, %v1824_v33 }
 0x3b2   : > { %v1857_v63 = vpack.c.bf16 %v1825_v35, %v1825_v35  ;;  %v1829_v5 = vmax.f32 %v3451_v1, 0.0  ;;  %v1858_v16 = vpack.c.bf16 %v1826_v60, %v1826_v60  ;;  %v1830_v17 = vmax.f32 %v3461_v6, 0.0 }
 0x3b3   : > { %1885 = vst [vmem:[#allocation3] sm:$0xf] %v1853_v37  ;;  %v1859_v32 = vpack.c.bf16 %v1827_v41, %v1827_v41  ;;  %v1831_v39 = vmax.f32 %v3471_v13, 0.0  ;;  %v1860_v36 = vpack.c.bf16 %v1828_v20, %v1828_v20  ;;  %v1832_v48 = vmax.f32 %v3481_v34, 0.0 }
 0x3b4   : > { %1886 = vst [vmem:[#allocation3 + $0xc] sm:$0xf] %v1854_v9  ;;  %v1861_v47 = vpack.c.bf16 %v1829_v5, %v1829_v5  ;;  %v1833_v54 = vmax.f32 %v3491_v44, 0.0  ;;  %v1862_v50 = vpack.c.bf16 %v1830_v17, %v1830_v17  ;;  %v1834_v1 = vmax.f32 %v3501_v42, 0.0 }
 0x3b5   : > { %1887 = vst [vmem:[#allocation3 + $0x18] sm:$0xf] %v1855_v30  ;;  %v1863_v52 = vpack.c.bf16 %v1831_v39, %v1831_v39  ;;  %v1835_v6 = vmax.f32 %v3511_v4, 0.0  ;;  %v1864_v23 = vpack.c.bf16 %v1832_v48, %v1832_v48  ;;  %v1836_v57 = vmax.f32 %v1743_v19, 0.0 }
 0x3b6   : > { %1888 = vst [vmem:[#allocation3 + $0x24] sm:$0xf] %v1856_v43  ;;  %v1865_v13 = vpack.c.bf16 %v1833_v54, %v1833_v54  ;;  %v1837_v58 = vmax.f32 %v3376_v7, 0.0  ;;  %v1866_v34 = vpack.c.bf16 %v1834_v1, %v1834_v1  ;;  %v1838_v59 = vmax.f32 %v3386_v62, 0.0 }
 0x3b7   : > { %1889 = vst [vmem:[#allocation3 + $0x30] sm:$0xf] %v1857_v63  ;;  %v1867_v44 = vpack.c.bf16 %v1835_v6, %v1835_v6  ;;  %v1839_v45 = vmax.f32 %v3396_v24, 0.0  ;;  %v1868_v42 = vpack.c.bf16 %v1836_v57, %v1836_v57  ;;  %v1840_v0 = vmax.f32 %v3406_v28, 0.0 }
 0x3b8   : > { %1890 = vst [vmem:[#allocation3 + $0x3c] sm:$0xf] %v1858_v16  ;;  %v1869_v3 = vpack.c.bf16 %v1837_v58, %v1837_v58  ;;  %v1841_v4 = vmax.f32 %v3416_v38, 0.0  ;;  %v1870_v55 = vpack.c.bf16 %v1838_v59, %v1838_v59  ;;  %v1842_v7 = vmax.f32 %v3426_v46, 0.0 }
 0x3b9   : > { %1891 = vst [vmem:[#allocation3 + $0x48] sm:$0xf] %v1859_v32  ;;  %v1871_v56 = vpack.c.bf16 %v1839_v45, %v1839_v45  ;;  %v1843_v62 = vmax.f32 %v3436_v53, 0.0  ;;  %v1872_v10 = vpack.c.bf16 %v1840_v0, %v1840_v0  ;;  %v1844_v24 = vmax.f32 %v3446_v49, 0.0 }
 0x3ba   : > { %1892 = vst [vmem:[#allocation3 + $0x54] sm:$0xf] %v1860_v36  ;;  %v1873_v12 = vpack.c.bf16 %v1841_v4, %v1841_v4  ;;  %v1845_v28 = vmax.f32 %v3456_v8, 0.0  ;;  %v1874_v15 = vpack.c.bf16 %v1842_v7, %v1842_v7  ;;  %v1846_v38 = vmax.f32 %v3466_v21, 0.0 }
 0x3bb   : > { %1893 = vst [vmem:[#allocation3 + $0x60] sm:$0xf] %v1861_v47  ;;  %v1875_v14 = vpack.c.bf16 %v1843_v62, %v1843_v62  ;;  %v1847_v46 = vmax.f32 %v3476_v29, 0.0  ;;  %v1876_v19 = vpack.c.bf16 %v1844_v24, %v1844_v24  ;;  %v1848_v53 = vmax.f32 %v3486_v40, 0.0 }
 0x3bc   : > { %1894 = vst [vmem:[#allocation3 + $0x6c] sm:$0xf] %v1862_v50  ;;  %v1877_v18 = vpack.c.bf16 %v1845_v28, %v1845_v28  ;;  %v1849_v49 = vmax.f32 %v3496_v51, 0.0  ;;  %v1878_v2 = vpack.c.bf16 %v1846_v38, %v1846_v38  ;;  %v1850_v8 = vmax.f32 %v3506_v61, 0.0 }
 0x3bd   : > { %1895 = vst [vmem:[#allocation3 + $0x78] sm:$0xf] %v1863_v52  ;;  %v1879_v22 = vpack.c.bf16 %v1847_v46, %v1847_v46  ;;  %v1851_v21 = vmax.f32 %v3516_v11, 0.0  ;;  %v1880_v26 = vpack.c.bf16 %v1848_v53, %v1848_v53  ;;  %v1852_v29 = vmax.f32 %v3523_v25, 0.0 }
 0x3be   : > { %1896 = vst [vmem:[#allocation3 + $0x84] sm:$0xf] %v1864_v23  ;;  %v1881_v27 = vpack.c.bf16 %v1849_v49, %v1849_v49  ;;  %v1882_v40 = vpack.c.bf16 %v1850_v8, %v1850_v8 }
 0x3bf   : > { %1897 = vst [vmem:[#allocation3 + $0x90] sm:$0xf] %v1865_v13  ;;  %v1883_v31 = vpack.c.bf16 %v1851_v21, %v1851_v21  ;;  %v1884_v51 = vpack.c.bf16 %v1852_v29, %v1852_v29 }
 0x3c0   : > { %1898 = vst [vmem:[#allocation3 + $0x9c] sm:$0xf] %v1866_v34 }
 0x3c1   : > { %1899 = vst [vmem:[#allocation3 + $0xa8] sm:$0xf] %v1867_v44 }
 0x3c2   : > { %1900 = vst [vmem:[#allocation3 + $0xb4] sm:$0xf] %v1868_v42 }
 0x3c3   : > { %1901 = vst [vmem:[#allocation3 + $0xc0] sm:$0xf] %v1869_v3 }
 0x3c4   : > { %1902 = vst [vmem:[#allocation3 + $0xcc] sm:$0xf] %v1870_v55 }
 0x3c5   : > { %1903 = vst [vmem:[#allocation3 + $0xd8] sm:$0xf] %v1871_v56 }
 0x3c6   : > { %1904 = vst [vmem:[#allocation3 + $0xe4] sm:$0xf] %v1872_v10 }
 0x3c7   : > { %1905 = vst [vmem:[#allocation3 + $0xf0] sm:$0xf] %v1873_v12 }
 0x3c8   : > { %1906 = vst [vmem:[#allocation3 + $0xfc] sm:$0xf] %v1874_v15 }
 0x3c9   : > { %1907 = vst [vmem:[#allocation3 + $0x108] sm:$0xf] %v1875_v14 }
 0x3ca   : > { %1908 = vst [vmem:[#allocation3 + $0x114] sm:$0xf] %v1876_v19 }
 0x3cb   : > { %1909 = vst [vmem:[#allocation3 + $0x120] sm:$0xf] %v1877_v18 }
 0x3cc   : > { %1910 = vst [vmem:[#allocation3 + $0x12c] sm:$0xf] %v1878_v2 }
 0x3cd   : > { %1911 = vst [vmem:[#allocation3 + $0x138] sm:$0xf] %v1879_v22 }
 0x3ce   : > { %1912 = vst [vmem:[#allocation3 + $0x144] sm:$0xf] %v1880_v26 }
 0x3cf   : > { %1913 = vst [vmem:[#allocation3 + $0x150] sm:$0xf] %v1881_v27 }
 0x3d0   : > { %1914 = vst [vmem:[#allocation3 + $0x15c] sm:$0xf] %v1882_v40 }
 0x3d1   : > { %1915 = vst [vmem:[#allocation3 + $0x168] sm:$0xf] %v1883_v31 }
 0x3d2   : > { %1916 = vst [vmem:[#allocation3 + $0x174] sm:$0xf] %v1884_v51 }
 0x3d3 PF: > { %1923 = sbr.rel (!%p3170_p9) target bundleno = 1013 (0x3f5), region = 60  ;;  %s2699_s10 = sshll.u32 (%p3170_p9), %s3148_s19, 3  ;;  %v2016_v61 = vld [vmem:[%s3245_s7] sm:$0xff] (%p3170_p9)  ;;  %v2018_v11 = vld [vmem:[%s3245_s7 + $0x8] sm:$0xff] (%p3170_p9)  ;;  %v2020_v25 = vld [vmem:[%s3245_s7 + $0x10] sm:$0xff] (%p3170_p9) }
 0x3d4   : > { %s3567_s27 = scalar_lea.vmem (%p3170_p9), %s3648_s4, %s2699_s10  ;;  %v2022_v33 = vld [vmem:[%s3245_s7 + $0x18] sm:$0xff] (%p3170_p9)  ;;  %v2024_v35 = vld [vmem:[%s3245_s7 + $0x20] sm:$0xff] (%p3170_p9)  ;;  %v2026_v60 = vld [vmem:[%s3245_s7 + $0x28] sm:$0xff] (%p3170_p9) }
 0x3d5   : > { %2017 = vst [vmem:[%s3567_s27] sm:$0xff] (%p3170_p9), %v2016_v61  ;;  %v2028_v37 = vld [vmem:[%s3245_s7 + $0x30] sm:$0xff] (%p3170_p9)  ;;  %v2030_v9 = vld [vmem:[%s3245_s7 + $0x38] sm:$0xff] (%p3170_p9)  ;;  %v2032_v30 = vld [vmem:[%s3245_s7 + $0x40] sm:$0xff] (%p3170_p9) }
 0x3d6   : > { %2019 = vst [vmem:[%s3567_s27 + $0x18] sm:$0xff] (%p3170_p9), %v2018_v11  ;;  %v2034_v41 = vld [vmem:[%s3245_s7 + $0x48] sm:$0xff] (%p3170_p9)  ;;  %v2036_v43 = vld [vmem:[%s3245_s7 + $0x50] sm:$0xff] (%p3170_p9)  ;;  %v2038_v20 = vld [vmem:[%s3245_s7 + $0x58] sm:$0xff] (%p3170_p9) }
 0x3d7   : > { %2021 = vst [vmem:[%s3567_s27 + $0x30] sm:$0xff] (%p3170_p9), %v2020_v25  ;;  %v2040_v63 = vld [vmem:[%s3245_s7 + $0x60] sm:$0xff] (%p3170_p9)  ;;  %v2042_v5 = vld [vmem:[%s3245_s7 + $0x68] sm:$0xff] (%p3170_p9)  ;;  %v2044_v16 = vld [vmem:[%s3245_s7 + $0x70] sm:$0xff] (%p3170_p9) }
 0x3d8   : > { %2023 = vst [vmem:[%s3567_s27 + $0x48] sm:$0xff] %v2022_v33  ;;  %v2046_v17 = vld [vmem:[%s3245_s7 + $0x78] sm:$0xff]  ;;  %v2048_v32 = vld [vmem:[%s3245_s7 + $0x80] sm:$0xff]  ;;  %v2050_v39 = vld [vmem:[%s3245_s7 + $0x88] sm:$0xff] }
 0x3d9   : > { %2025 = vst [vmem:[%s3567_s27 + $0x60] sm:$0xff] %v2024_v35  ;;  %v2052_v36 = vld [vmem:[%s3245_s7 + $0x90] sm:$0xff]  ;;  %v2054_v48 = vld [vmem:[%s3245_s7 + $0x98] sm:$0xff]  ;;  %v2056_v47 = vld [vmem:[%s3245_s7 + $0xa0] sm:$0xff] }
 0x3da   : > { %2027 = vst [vmem:[%s3567_s27 + $0x78] sm:$0xff] %v2026_v60  ;;  %v2058_v54 = vld [vmem:[%s3245_s7 + $0xa8] sm:$0xff]  ;;  %v2060_v50 = vld [vmem:[%s3245_s7 + $0xb0] sm:$0xff]  ;;  %v2062_v1 = vld [vmem:[%s3245_s7 + $0xb8] sm:$0xff] }
 0x3db   : > { %2029 = vst [vmem:[%s3567_s27 + $0x90] sm:$0xff] %v2028_v37  ;;  %v2064_v52 = vld [vmem:[%s3245_s7 + $0xc0] sm:$0xff]  ;;  %v2066_v6 = vld [vmem:[%s3245_s7 + $0xc8] sm:$0xff]  ;;  %v2068_v23 = vld [vmem:[%s3245_s7 + $0xd0] sm:$0xff] }
 0x3dc   : > { %2031 = vst [vmem:[%s3567_s27 + $0xa8] sm:$0xff] %v2030_v9  ;;  %v2070_v57 = vld [vmem:[%s3245_s7 + $0xd8] sm:$0xff]  ;;  %v2072_v13 = vld [vmem:[%s3245_s7 + $0xe0] sm:$0xff]  ;;  %v2074_v58 = vld [vmem:[%s3245_s7 + $0xe8] sm:$0xff] }
 0x3dd   : > { %2033 = vst [vmem:[%s3567_s27 + $0xc0] sm:$0xff] %v2032_v30  ;;  %v2076_v34 = vld [vmem:[%s3245_s7 + $0xf0] sm:$0xff]  ;;  %v2078_v59 = vld [vmem:[%s3245_s7 + $0xf8] sm:$0xff] }
 0x3de   : > { %2035 = vst [vmem:[%s3567_s27 + $0xd8] sm:$0xff] %v2034_v41 }
 0x3df   : > { %2037 = vst [vmem:[%s3567_s27 + $0xf0] sm:$0xff] %v2036_v43 }
 0x3e0   : > { %2039 = vst [vmem:[%s3567_s27 + $0x108] sm:$0xff] %v2038_v20 }
 0x3e1   : > { %2041 = vst [vmem:[%s3567_s27 + $0x120] sm:$0xff] %v2040_v63 }
 0x3e2   : > { %2043 = vst [vmem:[%s3567_s27 + $0x138] sm:$0xff] %v2042_v5 }
 0x3e3   : > { %2045 = vst [vmem:[%s3567_s27 + $0x150] sm:$0xff] %v2044_v16 }
 0x3e4   : > { %2047 = vst [vmem:[%s3567_s27 + $0x168] sm:$0xff] %v2046_v17 }
 0x3e5   : > { %2049 = vst [vmem:[%s3567_s27 + $0x180] sm:$0xff] %v2048_v32 }
 0x3e6   : > { %2051 = vst [vmem:[%s3567_s27 + $0x198] sm:$0xff] %v2050_v39 }
 0x3e7   : > { %2053 = vst [vmem:[%s3567_s27 + $0x1b0] sm:$0xff] %v2052_v36 }
 0x3e8   : > { %2055 = vst [vmem:[%s3567_s27 + $0x1c8] sm:$0xff] %v2054_v48 }
 0x3e9   : > { %2057 = vst [vmem:[%s3567_s27 + $0x1e0] sm:$0xff] %v2056_v47 }
 0x3ea   : > { %2059 = vst [vmem:[%s3567_s27 + $0x1f8] sm:$0xff] %v2058_v54 }
 0x3eb   : > { %2061 = vst [vmem:[%s3567_s27 + $0x210] sm:$0xff] %v2060_v50 }
 0x3ec   : > { %2063 = vst [vmem:[%s3567_s27 + $0x228] sm:$0xff] %v2062_v1 }
 0x3ed   : > { %2065 = vst [vmem:[%s3567_s27 + $0x240] sm:$0xff] %v2064_v52 }
 0x3ee   : > { %2067 = vst [vmem:[%s3567_s27 + $0x258] sm:$0xff] %v2066_v6 }
 0x3ef   : > { %2069 = vst [vmem:[%s3567_s27 + $0x270] sm:$0xff] %v2068_v23 }
 0x3f0   : > { %2071 = vst [vmem:[%s3567_s27 + $0x288] sm:$0xff] %v2070_v57 }
 0x3f1   : > { %2073 = vst [vmem:[%s3567_s27 + $0x2a0] sm:$0xff] %v2072_v13 }
 0x3f2   : > { %2075 = vst [vmem:[%s3567_s27 + $0x2b8] sm:$0xff] %v2074_v58 }
 0x3f3   : > { %2077 = vst [vmem:[%s3567_s27 + $0x2d0] sm:$0xff] %v2076_v34 }
 0x3f4   : > { %2079 = vst [vmem:[%s3567_s27 + $0x2e8] sm:$0xff] %v2078_v59 }
 0x3f5 PF: > { %p17_p9 = scmp.ge.s32.totalorder %s3151_s20, 5   ;;  %s3653_s15 = smov %s3090_s16 }
 0x3f6   : > { %s3654_s16 = smov %s3094_s17  ;;  %s3655_s17 = smov %s3161_s23 }
 0x3f7   : > { %s3656_s18 = smov %s3151_s20  ;;  %19 = sbr.rel (!%p17_p9) target bundleno = 5 (0x5), region = 141 }
 0x3fc   :  { %2095 = vsyncpa [#allocation7], 1 }
 0x3fd   :  { %2097 = vsyncpa [#allocation7 + $0x1], 1 }
 0x3fe   :  { %2098 = vsyncpa [#allocation9], 1 }
 0x3ff   :  { %2100 = vsyncpa [#allocation9 + $0x1], 1 }
 0x400   :  { %2101 = vsyncmov [#allocation5] }
 0x403   :  { %s2102_s19 = vpop.sfrf %2101 }
 0x404   :  { %p2702_p5 = scmp.ne.s32.totalorder %s2102_s19, 0 }
 0x406   :  { %2106 = shalt.err (%p2702_p5)  }
 0x407   :  { %2108 = vsyncmov [#allocation5 + $0x1] }
 0x40a   :  { %s2109_s25 = vpop.sfrf %2108 }
 0x40b   :  { %p2703_p6 = scmp.ne.s32.totalorder %s2109_s25, 0 }
 0x40d   :  { %2113 = shalt.err (%p2703_p6)  }

</bundles_post_ra>
